<compile_context>
chip_gen: v6e
topology: v6e:2x2x1
jax: 0.10.0
libtpu: 0.0.40
codegen_flags: <defaults>
</compile_context>

<pallas_src>
import jax
import jax.numpy as jnp
import numpy as np
from jax.experimental import pallas as pl
from jax.experimental.pallas import tpu as pltpu


# ---------------------------------------------------------------------------
# Static layer geometry (module hard-codes encoder_size=64)
# ---------------------------------------------------------------------------
def _layer_dims(image_size, channels, enc, latent):
    return [
        (image_size, image_size, channels, enc // 2),
        (image_size // 2, image_size // 2, enc // 2, enc),
        (image_size // 4, image_size // 4, enc, latent),
    ]


# ---------------------------------------------------------------------------
# Fused kernel: conv1 -> conv2 -> conv3 -> [fc_mu|fc_logvar] -> sample -> dec
# ---------------------------------------------------------------------------
def _make_kernel(B, L, layers):
    def kernel(x_ref, m1_ref, b1_ref, m2_ref, b2_ref, m3_ref, b3_ref,
               wml_ref, bml_ref, wdec_ref, bdec_ref, eps_ref,
               hdec_ref, mulv_ref,
               a2_ref, a3_ref, y_ref):

        def conv_layer(a_ref, m_ref, b_ref, dims, out_ref):
            """One 4x4/s2/p1 conv + bias + ReLU.

            a_ref : ((Hin*B), (Win*Cin)) bf16   activation, row = h*B+b, lane = w*Cin+c
            m_ref : ((Win*Cin), 4*Wo*Cout) bf16 tap-folded weights (one block per di)
            out_ref (or None for last layer): ((Ho*B), (Wo*Cout)) bf16
            """
            Hin, Win, Cin, Cout = dims
            Ho, Wo = Hin // 2, Win // 2
            rows, cols = Hin * B, 4 * Wo * Cout

            # One MXU pass for the whole layer (bf16 x bf16 -> f32 accum).
            y = jnp.dot(a_ref[...], m_ref[...],
                        preferred_element_type=jnp.float32)
            y_ref[:rows, :cols] = y

            outs = []
            for ho in range(Ho):                       # static, <= 8 iters
                acc = jnp.zeros((B, Wo * Cout), jnp.float32)
                for di in range(4):                    # static
                    h = 2 * ho - 1 + di                # padding=1 folded here
                    if 0 <= h < Hin:                   # out-of-range == zero pad
                        acc = acc + y_ref[pl.ds(h * B, B),
                                          pl.ds(di * Wo * Cout, Wo * Cout)]
                act = jnp.maximum(acc + b_ref[...], 0.0)       # (B, Wo*Cout) f32
                if out_ref is not None:
                    # full-lane-width, unit-stride store of the next activation
                    out_ref[pl.ds(ho * B, B), :] = act.astype(out_ref.dtype)
                else:
                    outs.append(act)
            return outs

        conv_layer(x_ref, m1_ref, b1_ref, layers[0], a2_ref)
        conv_layer(a2_ref, m2_ref, b2_ref, layers[1], a3_ref)
        ys = conv_layer(a3_ref, m3_ref, b3_ref, layers[2], None)

        # Flatten (NHWC order; fc weight columns were permuted once in prep).
        h_flat = jnp.concatenate(ys, axis=1).astype(jnp.bfloat16)     # (B, F)

        # Fused [fc_mu | fc_logvar] matmul, reparameterization, decoder_fc.
        mulv = jnp.dot(h_flat, wml_ref[...],
                       preferred_element_type=jnp.float32) + bml_ref[...]
        mulv_ref[...] = mulv                                           # (B, 2L)
        mu = mulv[:, :L]
        logvar = mulv[:, L:]
        z = mu + eps_ref[...] * jnp.exp(0.5 * logvar)                  # (B, L)
        hdec_ref[...] = jnp.dot(z.astype(jnp.bfloat16), wdec_ref[...],
                                preferred_element_type=jnp.float32) + bdec_ref[...]

    return kernel


def _fused_forward(x_rows, prep, eps, cfg):
    B = cfg["B"]
    L = cfg["latent"]
    img, ch, enc = cfg["image_size"], cfg["channels"], cfg["enc"]
    oi = img // 8
    F = L * oi * oi
    layers = _layer_dims(img, ch, enc, L)
    (H1, W1, C1, C2), (H2, W2, _, C3), (H3, W3, _, _) = layers

    a2_shape = (H2 * B, W2 * C2)
    a3_shape = (H3 * B, W3 * C3)
    y_shape = (max(Hin * B for Hin, _, _, _ in layers),
               max(4 * (Win // 2) * Cout for _, Win, _, Cout in layers))

    def full(shape):
        return pl.BlockSpec(shape, lambda i: (0,) * len(shape))

    operands = (x_rows, prep["m1"], prep["b1"], prep["m2"], prep["b2"],
                prep["m3"], prep["b3"], prep["wml"], prep["bml"],
                prep["wdec"], prep["bdec"], eps)

    hdec, mulv = pl.pallas_call(
        _make_kernel(B, L, layers),
        out_shape=(jax.ShapeDtypeStruct((B, F), jnp.float32),
                   jax.ShapeDtypeStruct((B, 2 * L), jnp.float32)),
        grid_spec=pltpu.PrefetchScalarGridSpec(
            num_scalar_prefetch=0,
            grid=(1,),
            in_specs=[full(op.shape) for op in operands],
            out_specs=(full((B, F)), full((B, 2 * L))),
            scratch_shapes=[pltpu.VMEM(a2_shape, jnp.bfloat16),
                            pltpu.VMEM(a3_shape, jnp.bfloat16),
                            pltpu.VMEM(y_shape, jnp.float32)]),
        compiler_params=pltpu.CompilerParams(
            dimension_semantics=("arbitrary",),
            vmem_limit_bytes=32 * 1024 * 1024),
    )(*operands)
    return hdec, mulv


# ---------------------------------------------------------------------------
# One-time parameter preparation (hoisted out of the jitted forward)
# ---------------------------------------------------------------------------
def prepare_params(params, cfg):
    B = cfg["B"]
    L = cfg["latent"]
    img, ch, enc = cfg["image_size"], cfg["channels"], cfg["enc"]
    oi = img // 8
    F = L * oi * oi
    layers = _layer_dims(img, ch, enc, L)

    prep = {}
    for idx, (name, (Hin, Win, Cin, Cout)) in enumerate(
            zip(("conv1", "conv2", "conv3"), layers), start=1):
        w, b = params[name]
        w = np.asarray(w, np.float32)                        # (Cout, Cin, 4, 4)
        b = np.asarray(b, np.float32)                        # (Cout,)
        Wo = Win // 2
        # Tap-folded weight: M[w*Cin+c, di*Wo*Cout + wo*Cout + co] =
        #   w[co, c, di, dj]  where  dj = w - (2*wo - 1)  if 0 <= dj < 4 else 0.
        M = np.zeros((Win * Cin, 4 * Wo * Cout), np.float32)
        for wo in range(Wo):
            for dj in range(4):
                wcol = 2 * wo - 1 + dj
                if 0 <= wcol < Win:
                    for di in range(4):
                        c0 = di * Wo * Cout + wo * Cout
                        M[wcol * Cin:(wcol + 1) * Cin, c0:c0 + Cout] = w[:, :, di, dj].T
        prep[f"m{idx}"] = jnp.asarray(M, jnp.bfloat16)
        prep[f"b{idx}"] = jnp.asarray(np.tile(b, Wo).reshape(1, Wo * Cout),
                                      jnp.float32)

    wmu, bmu = params["fc_mu"]
    wlv, blv = params["fc_logvar"]
    wdec, bdec = params["decoder_fc"]

    def perm_cols(wfc):  # fc columns: NCHW-flat -> NHWC-flat (ho, wo, c)
        wfc = np.asarray(wfc, np.float32)
        return wfc.reshape(L, L, oi, oi).transpose(0, 2, 3, 1).reshape(L, F)

    wml = np.concatenate([perm_cols(wmu).T, perm_cols(wlv).T], axis=1)  # (F, 2L)
    prep["wml"] = jnp.asarray(wml, jnp.bfloat16)
    prep["bml"] = jnp.asarray(
        np.concatenate([np.asarray(bmu, np.float32),
                        np.asarray(blv, np.float32)]).reshape(1, 2 * L),
        jnp.float32)
    prep["wdec"] = jnp.asarray(np.asarray(wdec, np.float32).T, jnp.bfloat16)  # (L, F)
    prep["bdec"] = jnp.asarray(np.asarray(bdec, np.float32).reshape(1, F),
                               jnp.float32)
    return prep


# ---------------------------------------------------------------------------
# Forward wrapper (layout glue on the tiny input only)
# ---------------------------------------------------------------------------
def vae_encoder_pallas(x, prep, eps, cfg):
    """Equivalent of VAEEncoder.forward: returns (h_dec, mu, logvar)."""
    B, C, H, W = x.shape
    L = cfg["latent"]
    oi = cfg["image_size"] // 8
    # (B,C,H,W) -> rows = h*B+b, lanes = w*C+c
    x_rows = jnp.transpose(x, (2, 0, 3, 1)).reshape(H * B, W * C).astype(jnp.bfloat16)
    hdec, mulv = _fused_forward(x_rows, prep, eps, cfg)
    mu = mulv[:, :L]
    logvar = mulv[:, L:]
    return hdec.reshape(B, L, oi, oi), mu, logvar


# ---------------------------------------------------------------------------
# Pure-JAX reference (mirrors the PyTorch module; same bf16 cast points)
# ---------------------------------------------------------------------------
def vae_encoder_ref(x, params, eps):
    bf16 = jnp.bfloat16
    (w1, b1) = params["conv1"]
    (w2, b2) = params["conv2"]
    (w3, b3) = params["conv3"]
    wmu, bmu = params["fc_mu"]
    wlv, blv = params["fc_logvar"]
    wdec, bdec = params["decoder_fc"]

    def conv(h, w, b):
        y = jax.lax.conv_general_dilated(
            h.astype(bf16), w.astype(bf16), window_strides=(2, 2),
            padding=((1, 1), (1, 1)),
            dimension_numbers=("NCHW", "OIHW", "NCHW"),
            preferred_element_type=jnp.float32)
        return jax.nn.relu(y + b[None, :, None, None])

    h = conv(x, w1, b1)
    h = conv(h, w2, b2)
    h = conv(h, w3, b3)
    B = x.shape[0]
    L = wmu.shape[0]
    oi = x.shape[-1] // 8
    hf = h.reshape(B, -1).astype(bf16)
    mu = jnp.dot(hf, wmu.T.astype(bf16), preferred_element_type=jnp.float32) + bmu
    lv = jnp.dot(hf, wlv.T.astype(bf16), preferred_element_type=jnp.float32) + blv
    z = mu + eps * jnp.exp(0.5 * lv)
    hd = jnp.dot(z.astype(bf16), wdec.T.astype(bf16),
                 preferred_element_type=jnp.float32) + bdec
    return hd.reshape(B, L, oi, oi), mu, lv


if __name__ == "__main__":
    # Small shapes consistent with the module: batch=2, channels=1 (module
    # default), image_size=16 (-> output_image_size=2), latent_dim=32,
    # encoder_size=64 (hard-coded in the module: conv channels 1->32->64->32).
    B, CH, IMG, LATENT, ENC = 2, 1, 16, 32, 64
    cfg = dict(B=B, channels=CH, image_size=IMG, latent=LATENT, enc=ENC)
    OI = IMG // 8
    F = LATENT * OI * OI

    key = jax.random.PRNGKey(0)
    ks = jax.random.split(key, 14)

    x = jax.random.normal(ks[0], (B, CH, IMG, IMG), dtype=jnp.float32)

    def w(k, shape, scale):
        return jax.random.normal(k, shape, dtype=jnp.float32) * scale

    params = {
        "conv1": (w(ks[1], (ENC // 2, CH, 4, 4), 0.10), w(ks[2], (ENC // 2,), 0.02)),
        "conv2": (w(ks[3], (ENC, ENC // 2, 4, 4), 0.05), w(ks[4], (ENC,), 0.02)),
        "conv3": (w(ks[5], (LATENT, ENC, 4, 4), 0.05), w(ks[6], (LATENT,), 0.02)),
        "fc_mu": (w(ks[7], (LATENT, F), 0.05), w(ks[8], (LATENT,), 0.02)),
        "fc_logvar": (w(ks[9], (LATENT, F), 0.05), w(ks[10], (LATENT,), 0.02)),
        "decoder_fc": (w(ks[11], (F, LATENT), 0.05), w(ks[12], (F,), 0.02)),
    }
    eps = jax.random.normal(ks[13], (B, LATENT), dtype=jnp.float32)

    # One-time weight preparation (outside the jitted per-call path).
    prep = prepare_params(params, cfg)

    fwd = jax.jit(lambda x_, p_, e_: vae_encoder_pallas(x_, p_, e_, cfg))
    h_dec, mu, logvar = jax.block_until_ready(fwd(x, prep, eps))

    h_ref, mu_ref, lv_ref = vae_encoder_ref(x, params, eps)
    np.testing.assert_allclose(np.asarray(mu), np.asarray(mu_ref), rtol=2e-2, atol=2e-2)
    np.testing.assert_allclose(np.asarray(logvar), np.asarray(lv_ref), rtol=2e-2, atol=2e-2)
    np.testing.assert_allclose(np.asarray(h_dec), np.asarray(h_ref), rtol=2e-2, atol=2e-2)
    print("KERNEL_OK")
</pallas_src>

<mosaic_0001>
module attributes {stable_mosaic.version = 11 : i64} {
  func.func @kernel(%arg0: i32, %arg1: memref<32x16xbf16, #tpu.memory_space<vmem>>, %arg2: memref<16x1024xbf16, #tpu.memory_space<vmem>>, %arg3: memref<1x256xf32, #tpu.memory_space<vmem>>, %arg4: memref<256x1024xbf16, #tpu.memory_space<vmem>>, %arg5: memref<1x256xf32, #tpu.memory_space<vmem>>, %arg6: memref<256x256xbf16, #tpu.memory_space<vmem>>, %arg7: memref<1x64xf32, #tpu.memory_space<vmem>>, %arg8: memref<128x64xbf16, #tpu.memory_space<vmem>>, %arg9: memref<1x64xf32, #tpu.memory_space<vmem>>, %arg10: memref<32x128xbf16, #tpu.memory_space<vmem>>, %arg11: memref<1x128xf32, #tpu.memory_space<vmem>>, %arg12: memref<2x32xf32, #tpu.memory_space<vmem>>, %arg13: memref<2x128xf32, #tpu.memory_space<vmem>>, %arg14: memref<2x64xf32, #tpu.memory_space<vmem>>, %arg15: memref<16x256xbf16, #tpu.memory_space<vmem>>, %arg16: memref<8x256xbf16, #tpu.memory_space<vmem>>, %arg17: memref<32x1024xf32, #tpu.memory_space<vmem>>) attributes {dimension_semantics = [#tpu.dimension_semantics<arbitrary>], iteration_bounds = array<i64: 1>, scalar_prefetch = 0 : i64, scratch_operands = 3 : i64, tpu.core_type = #tpu.core_type<tc>, window_params = [{pipeline_mode = #tpu.pipeline_mode<synchronous>, transform_indices = @transform_0, window_bounds = array<i64: 32, 16>}, {pipeline_mode = #tpu.pipeline_mode<synchronous>, transform_indices = @transform_1, window_bounds = array<i64: 16, 1024>}, {pipeline_mode = #tpu.pipeline_mode<synchronous>, transform_indices = @transform_2, window_bounds = array<i64: 1, 256>}, {pipeline_mode = #tpu.pipeline_mode<synchronous>, transform_indices = @transform_3, window_bounds = array<i64: 256, 1024>}, {pipeline_mode = #tpu.pipeline_mode<synchronous>, transform_indices = @transform_4, window_bounds = array<i64: 1, 256>}, {pipeline_mode = #tpu.pipeline_mode<synchronous>, transform_indices = @transform_5, window_bounds = array<i64: 256, 256>}, {pipeline_mode = #tpu.pipeline_mode<synchronous>, transform_indices = @transform_6, window_bounds = array<i64: 1, 64>}, {pipeline_mode = #tpu.pipeline_mode<synchronous>, transform_indices = @transform_7, window_bounds = array<i64: 128, 64>}, {pipeline_mode = #tpu.pipeline_mode<synchronous>, transform_indices = @transform_8, window_bounds = array<i64: 1, 64>}, {pipeline_mode = #tpu.pipeline_mode<synchronous>, transform_indices = @transform_9, window_bounds = array<i64: 32, 128>}, {pipeline_mode = #tpu.pipeline_mode<synchronous>, transform_indices = @transform_10, window_bounds = array<i64: 1, 128>}, {pipeline_mode = #tpu.pipeline_mode<synchronous>, transform_indices = @transform_11, window_bounds = array<i64: 2, 32>}, {pipeline_mode = #tpu.pipeline_mode<synchronous>, transform_indices = @transform_12, window_bounds = array<i64: 2, 128>}, {pipeline_mode = #tpu.pipeline_mode<synchronous>, transform_indices = @transform_13, window_bounds = array<i64: 2, 64>}]} {
    %c0 = arith.constant 0 : index
    %c0_0 = arith.constant 0 : index
    %0 = vector.load %arg1[%c0, %c0_0] : memref<32x16xbf16, #tpu.memory_space<vmem>>, vector<32x16xbf16>
    %c0_1 = arith.constant 0 : index
    %c0_2 = arith.constant 0 : index
    %1 = vector.load %arg2[%c0_1, %c0_2] : memref<16x1024xbf16, #tpu.memory_space<vmem>>, vector<16x1024xbf16>
    %cst = arith.constant dense<0.000000e+00> : vector<32x1024xf32>
    %2 = tpu.matmul %0, %1, %cst {dimension_numbers = #tpu.dot_dimension_numbers<[1], [0], [0], [1], [0, 0, 1, 1], [], []>} : vector<32x16xbf16>, vector<16x1024xbf16>, vector<32x1024xf32> -> vector<32x1024xf32>
    %c0_3 = arith.constant 0 : index
    %c0_4 = arith.constant 0 : index
    %3 = vector.load %arg17[%c0_3, %c0_4] : memref<32x1024xf32, #tpu.memory_space<vmem>>, vector<32x1024xf32>
    tpu.vector_store %arg17[%c0_3, %c0_4], %2 {strides = array<i32>} : memref<32x1024xf32, #tpu.memory_space<vmem>>, vector<32x1024xf32>,
    %cst_5 = arith.constant 0.000000e+00 : f32
    %4 = vector.broadcast %cst_5 : f32 to vector<2x256xf32>
    %c0_6 = arith.constant 0 : index
    %c256 = arith.constant 256 : index
    %5 = vector.load %arg17[%c0_6, %c256] : memref<32x1024xf32, #tpu.memory_space<vmem>>, vector<2x256xf32>
    %6 = arith.addf %4, %5 : vector<2x256xf32>
    %c2 = arith.constant 2 : index
    %c512 = arith.constant 512 : index
    %7 = vector.load %arg17[%c2, %c512] : memref<32x1024xf32, #tpu.memory_space<vmem>>, vector<2x256xf32>
    %8 = arith.addf %6, %7 : vector<2x256xf32>
    %c4 = arith.constant 4 : index
    %c768 = arith.constant 768 : index
    %9 = vector.load %arg17[%c4, %c768] : memref<32x1024xf32, #tpu.memory_space<vmem>>, vector<2x256xf32>
    %10 = arith.addf %8, %9 : vector<2x256xf32>
    %c0_7 = arith.constant 0 : index
    %c0_8 = arith.constant 0 : index
    %11 = vector.load %arg3[%c0_7, %c0_8] : memref<1x256xf32, #tpu.memory_space<vmem>>, vector<1x256xf32>
    %12 = vector.broadcast %11 : vector<1x256xf32> to vector<2x256xf32>
    %13 = arith.addf %10, %12 : vector<2x256xf32>
    %cst_9 = arith.constant 0.000000e+00 : f32
    %14 = vector.broadcast %cst_9 : f32 to vector<2x256xf32>
    %15 = arith.maximumf %13, %14 : vector<2x256xf32>
    %16 = arith.truncf %15 : vector<2x256xf32> to vector<2x256xbf16>
    %c0_10 = arith.constant 0 : index
    %c0_11 = arith.constant 0 : index
    %17 = vector.load %arg15[%c0_10, %c0_11] : memref<16x256xbf16, #tpu.memory_space<vmem>>, vector<2x256xbf16>
    tpu.vector_store %arg15[%c0_10, %c0_11], %16 {strides = array<i32>} : memref<16x256xbf16, #tpu.memory_space<vmem>>, vector<2x256xbf16>,
    %cst_12 = arith.constant 0.000000e+00 : f32
    %18 = vector.broadcast %cst_12 : f32 to vector<2x256xf32>
    %c2_13 = arith.constant 2 : index
    %c0_14 = arith.constant 0 : index
    %19 = vector.load %arg17[%c2_13, %c0_14] : memref<32x1024xf32, #tpu.memory_space<vmem>>, vector<2x256xf32>
    %20 = arith.addf %18, %19 : vector<2x256xf32>
    %c4_15 = arith.constant 4 : index
    %c256_16 = arith.constant 256 : index
    %21 = vector.load %arg17[%c4_15, %c256_16] : memref<32x1024xf32, #tpu.memory_space<vmem>>, vector<2x256xf32>
    %22 = arith.addf %20, %21 : vector<2x256xf32>
    %c6 = arith.constant 6 : index
    %c512_17 = arith.constant 512 : index
    %23 = vector.load %arg17[%c6, %c512_17] : memref<32x1024xf32, #tpu.memory_space<vmem>>, vector<2x256xf32>
    %24 = arith.addf %22, %23 : vector<2x256xf32>
    %c8 = arith.constant 8 : index
    %c768_18 = arith.constant 768 : index
    %25 = vector.load %arg17[%c8, %c768_18] : memref<32x1024xf32, #tpu.memory_space<vmem>>, vector<2x256xf32>
    %26 = arith.addf %24, %25 : vector<2x256xf32>
    %c0_19 = arith.constant 0 : index
    %c0_20 = arith.constant 0 : index
    %27 = vector.load %arg3[%c0_19, %c0_20] : memref<1x256xf32, #tpu.memory_space<vmem>>, vector<1x256xf32>
    %28 = vector.broadcast %27 : vector<1x256xf32> to vector<2x256xf32>
    %29 = arith.addf %26, %28 : vector<2x256xf32>
    %cst_21 = arith.constant 0.000000e+00 : f32
    %30 = vector.broadcast %cst_21 : f32 to vector<2x256xf32>
    %31 = arith.maximumf %29, %30 : vector<2x256xf32>
    %32 = arith.truncf %31 : vector<2x256xf32> to vector<2x256xbf16>
    %c2_22 = arith.constant 2 : index
    %c0_23 = arith.constant 0 : index
    %33 = vector.load %arg15[%c2_22, %c0_23] : memref<16x256xbf16, #tpu.memory_space<vmem>>, vector<2x256xbf16>
    tpu.vector_store %arg15[%c2_22, %c0_23], %32 {strides = array<i32>} : memref<16x256xbf16, #tpu.memory_space<vmem>>, vector<2x256xbf16>,
    %cst_24 = arith.constant 0.000000e+00 : f32
    %34 = vector.broadcast %cst_24 : f32 to vector<2x256xf32>
    %c6_25 = arith.constant 6 : index
    %c0_26 = arith.constant 0 : index
    %35 = vector.load %arg17[%c6_25, %c0_26] : memref<32x1024xf32, #tpu.memory_space<vmem>>, vector<2x256xf32>
    %36 = arith.addf %34, %35 : vector<2x256xf32>
    %c8_27 = arith.constant 8 : index
    %c256_28 = arith.constant 256 : index
    %37 = vector.load %arg17[%c8_27, %c256_28] : memref<32x1024xf32, #tpu.memory_space<vmem>>, vector<2x256xf32>
    %38 = arith.addf %36, %37 : vector<2x256xf32>
    %c10 = arith.constant 10 : index
    %c512_29 = arith.constant 512 : index
    %39 = vector.load %arg17[%c10, %c512_29] : memref<32x1024xf32, #tpu.memory_space<vmem>>, vector<2x256xf32>
    %40 = arith.addf %38, %39 : vector<2x256xf32>
    %c12 = arith.constant 12 : index
    %c768_30 = arith.constant 768 : index
    %41 = vector.load %arg17[%c12, %c768_30] : memref<32x1024xf32, #tpu.memory_space<vmem>>, vector<2x256xf32>
    %42 = arith.addf %40, %41 : vector<2x256xf32>
    %c0_31 = arith.constant 0 : index
    %c0_32 = arith.constant 0 : index
    %43 = vector.load %arg3[%c0_31, %c0_32] : memref<1x256xf32, #tpu.memory_space<vmem>>, vector<1x256xf32>
    %44 = vector.broadcast %43 : vector<1x256xf32> to vector<2x256xf32>
    %45 = arith.addf %42, %44 : vector<2x256xf32>
    %cst_33 = arith.constant 0.000000e+00 : f32
    %46 = vector.broadcast %cst_33 : f32 to vector<2x256xf32>
    %47 = arith.maximumf %45, %46 : vector<2x256xf32>
    %48 = arith.truncf %47 : vector<2x256xf32> to vector<2x256xbf16>
    %c4_34 = arith.constant 4 : index
    %c0_35 = arith.constant 0 : index
    %49 = vector.load %arg15[%c4_34, %c0_35] : memref<16x256xbf16, #tpu.memory_space<vmem>>, vector<2x256xbf16>
    tpu.vector_store %arg15[%c4_34, %c0_35], %48 {strides = array<i32>} : memref<16x256xbf16, #tpu.memory_space<vmem>>, vector<2x256xbf16>,
    %cst_36 = arith.constant 0.000000e+00 : f32
    %50 = vector.broadcast %cst_36 : f32 to vector<2x256xf32>
    %c10_37 = arith.constant 10 : index
    %c0_38 = arith.constant 0 : index
    %51 = vector.load %arg17[%c10_37, %c0_38] : memref<32x1024xf32, #tpu.memory_space<vmem>>, vector<2x256xf32>
    %52 = arith.addf %50, %51 : vector<2x256xf32>
    %c12_39 = arith.constant 12 : index
    %c256_40 = arith.constant 256 : index
    %53 = vector.load %arg17[%c12_39, %c256_40] : memref<32x1024xf32, #tpu.memory_space<vmem>>, vector<2x256xf32>
    %54 = arith.addf %52, %53 : vector<2x256xf32>
    %c14 = arith.constant 14 : index
    %c512_41 = arith.constant 512 : index
    %55 = vector.load %arg17[%c14, %c512_41] : memref<32x1024xf32, #tpu.memory_space<vmem>>, vector<2x256xf32>
    %56 = arith.addf %54, %55 : vector<2x256xf32>
    %c16 = arith.constant 16 : index
    %c768_42 = arith.constant 768 : index
    %57 = vector.load %arg17[%c16, %c768_42] : memref<32x1024xf32, #tpu.memory_space<vmem>>, vector<2x256xf32>
    %58 = arith.addf %56, %57 : vector<2x256xf32>
    %c0_43 = arith.constant 0 : index
    %c0_44 = arith.constant 0 : index
    %59 = vector.load %arg3[%c0_43, %c0_44] : memref<1x256xf32, #tpu.memory_space<vmem>>, vector<1x256xf32>
    %60 = vector.broadcast %59 : vector<1x256xf32> to vector<2x256xf32>
    %61 = arith.addf %58, %60 : vector<2x256xf32>
    %cst_45 = arith.constant 0.000000e+00 : f32
    %62 = vector.broadcast %cst_45 : f32 to vector<2x256xf32>
    %63 = arith.maximumf %61, %62 : vector<2x256xf32>
    %64 = arith.truncf %63 : vector<2x256xf32> to vector<2x256xbf16>
    %c6_46 = arith.constant 6 : index
    %c0_47 = arith.constant 0 : index
    %65 = vector.load %arg15[%c6_46, %c0_47] : memref<16x256xbf16, #tpu.memory_space<vmem>>, vector<2x256xbf16>
    tpu.vector_store %arg15[%c6_46, %c0_47], %64 {strides = array<i32>} : memref<16x256xbf16, #tpu.memory_space<vmem>>, vector<2x256xbf16>,
    %cst_48 = arith.constant 0.000000e+00 : f32
    %66 = vector.broadcast %cst_48 : f32 to vector<2x256xf32>
    %c14_49 = arith.constant 14 : index
    %c0_50 = arith.constant 0 : index
    %67 = vector.load %arg17[%c14_49, %c0_50] : memref<32x1024xf32, #tpu.memory_space<vmem>>, vector<2x256xf32>
    %68 = arith.addf %66, %67 : vector<2x256xf32>
    %c16_51 = arith.constant 16 : index
    %c256_52 = arith.constant 256 : index
    %69 = vector.load %arg17[%c16_51, %c256_52] : memref<32x1024xf32, #tpu.memory_space<vmem>>, vector<2x256xf32>
    %70 = arith.addf %68, %69 : vector<2x256xf32>
    %c18 = arith.constant 18 : index
    %c512_53 = arith.constant 512 : index
    %71 = vector.load %arg17[%c18, %c512_53] : memref<32x1024xf32, #tpu.memory_space<vmem>>, vector<2x256xf32>
    %72 = arith.addf %70, %71 : vector<2x256xf32>
    %c20 = arith.constant 20 : index
    %c768_54 = arith.constant 768 : index
    %73 = vector.load %arg17[%c20, %c768_54] : memref<32x1024xf32, #tpu.memory_space<vmem>>, vector<2x256xf32>
    %74 = arith.addf %72, %73 : vector<2x256xf32>
    %c0_55 = arith.constant 0 : index
    %c0_56 = arith.constant 0 : index
    %75 = vector.load %arg3[%c0_55, %c0_56] : memref<1x256xf32, #tpu.memory_space<vmem>>, vector<1x256xf32>
    %76 = vector.broadcast %75 : vector<1x256xf32> to vector<2x256xf32>
    %77 = arith.addf %74, %76 : vector<2x256xf32>
    %cst_57 = arith.constant 0.000000e+00 : f32
    %78 = vector.broadcast %cst_57 : f32 to vector<2x256xf32>
    %79 = arith.maximumf %77, %78 : vector<2x256xf32>
    %80 = arith.truncf %79 : vector<2x256xf32> to vector<2x256xbf16>
    %c8_58 = arith.constant 8 : index
    %c0_59 = arith.constant 0 : index
    %81 = vector.load %arg15[%c8_58, %c0_59] : memref<16x256xbf16, #tpu.memory_space<vmem>>, vector<2x256xbf16>
    tpu.vector_store %arg15[%c8_58, %c0_59], %80 {strides = array<i32>} : memref<16x256xbf16, #tpu.memory_space<vmem>>, vector<2x256xbf16>,
    %cst_60 = arith.constant 0.000000e+00 : f32
    %82 = vector.broadcast %cst_60 : f32 to vector<2x256xf32>
    %c18_61 = arith.constant 18 : index
    %c0_62 = arith.constant 0 : index
    %83 = vector.load %arg17[%c18_61, %c0_62] : memref<32x1024xf32, #tpu.memory_space<vmem>>, vector<2x256xf32>
    %84 = arith.addf %82, %83 : vector<2x256xf32>
    %c20_63 = arith.constant 20 : index
    %c256_64 = arith.constant 256 : index
    %85 = vector.load %arg17[%c20_63, %c256_64] : memref<32x1024xf32, #tpu.memory_space<vmem>>, vector<2x256xf32>
    %86 = arith.addf %84, %85 : vector<2x256xf32>
    %c22 = arith.constant 22 : index
    %c512_65 = arith.constant 512 : index
    %87 = vector.load %arg17[%c22, %c512_65] : memref<32x1024xf32, #tpu.memory_space<vmem>>, vector<2x256xf32>
    %88 = arith.addf %86, %87 : vector<2x256xf32>
    %c24 = arith.constant 24 : index
    %c768_66 = arith.constant 768 : index
    %89 = vector.load %arg17[%c24, %c768_66] : memref<32x1024xf32, #tpu.memory_space<vmem>>, vector<2x256xf32>
    %90 = arith.addf %88, %89 : vector<2x256xf32>
    %c0_67 = arith.constant 0 : index
    %c0_68 = arith.constant 0 : index
    %91 = vector.load %arg3[%c0_67, %c0_68] : memref<1x256xf32, #tpu.memory_space<vmem>>, vector<1x256xf32>
    %92 = vector.broadcast %91 : vector<1x256xf32> to vector<2x256xf32>
    %93 = arith.addf %90, %92 : vector<2x256xf32>
    %cst_69 = arith.constant 0.000000e+00 : f32
    %94 = vector.broadcast %cst_69 : f32 to vector<2x256xf32>
    %95 = arith.maximumf %93, %94 : vector<2x256xf32>
    %96 = arith.truncf %95 : vector<2x256xf32> to vector<2x256xbf16>
    %c10_70 = arith.constant 10 : index
    %c0_71 = arith.constant 0 : index
    %97 = vector.load %arg15[%c10_70, %c0_71] : memref<16x256xbf16, #tpu.memory_space<vmem>>, vector<2x256xbf16>
    tpu.vector_store %arg15[%c10_70, %c0_71], %96 {strides = array<i32>} : memref<16x256xbf16, #tpu.memory_space<vmem>>, vector<2x256xbf16>,
    %cst_72 = arith.constant 0.000000e+00 : f32
    %98 = vector.broadcast %cst_72 : f32 to vector<2x256xf32>
    %c22_73 = arith.constant 22 : index
    %c0_74 = arith.constant 0 : index
    %99 = vector.load %arg17[%c22_73, %c0_74] : memref<32x1024xf32, #tpu.memory_space<vmem>>, vector<2x256xf32>
    %100 = arith.addf %98, %99 : vector<2x256xf32>
    %c24_75 = arith.constant 24 : index
    %c256_76 = arith.constant 256 : index
    %101 = vector.load %arg17[%c24_75, %c256_76] : memref<32x1024xf32, #tpu.memory_space<vmem>>, vector<2x256xf32>
    %102 = arith.addf %100, %101 : vector<2x256xf32>
    %c26 = arith.constant 26 : index
    %c512_77 = arith.constant 512 : index
    %103 = vector.load %arg17[%c26, %c512_77] : memref<32x1024xf32, #tpu.memory_space<vmem>>, vector<2x256xf32>
    %104 = arith.addf %102, %103 : vector<2x256xf32>
    %c28 = arith.constant 28 : index
    %c768_78 = arith.constant 768 : index
    %105 = vector.load %arg17[%c28, %c768_78] : memref<32x1024xf32, #tpu.memory_space<vmem>>, vector<2x256xf32>
    %106 = arith.addf %104, %105 : vector<2x256xf32>
    %c0_79 = arith.constant 0 : index
    %c0_80 = arith.constant 0 : index
    %107 = vector.load %arg3[%c0_79, %c0_80] : memref<1x256xf32, #tpu.memory_space<vmem>>, vector<1x256xf32>
    %108 = vector.broadcast %107 : vector<1x256xf32> to vector<2x256xf32>
    %109 = arith.addf %106, %108 : vector<2x256xf32>
    %cst_81 = arith.constant 0.000000e+00 : f32
    %110 = vector.broadcast %cst_81 : f32 to vector<2x256xf32>
    %111 = arith.maximumf %109, %110 : vector<2x256xf32>
    %112 = arith.truncf %111 : vector<2x256xf32> to vector<2x256xbf16>
    %c12_82 = arith.constant 12 : index
    %c0_83 = arith.constant 0 : index
    %113 = vector.load %arg15[%c12_82, %c0_83] : memref<16x256xbf16, #tpu.memory_space<vmem>>, vector<2x256xbf16>
    tpu.vector_store %arg15[%c12_82, %c0_83], %112 {strides = array<i32>} : memref<16x256xbf16, #tpu.memory_space<vmem>>, vector<2x256xbf16>,
    %cst_84 = arith.constant 0.000000e+00 : f32
    %114 = vector.broadcast %cst_84 : f32 to vector<2x256xf32>
    %c26_85 = arith.constant 26 : index
    %c0_86 = arith.constant 0 : index
    %115 = vector.load %arg17[%c26_85, %c0_86] : memref<32x1024xf32, #tpu.memory_space<vmem>>, vector<2x256xf32>
    %116 = arith.addf %114, %115 : vector<2x256xf32>
    %c28_87 = arith.constant 28 : index
    %c256_88 = arith.constant 256 : index
    %117 = vector.load %arg17[%c28_87, %c256_88] : memref<32x1024xf32, #tpu.memory_space<vmem>>, vector<2x256xf32>
    %118 = arith.addf %116, %117 : vector<2x256xf32>
    %c30 = arith.constant 30 : index
    %c512_89 = arith.constant 512 : index
    %119 = vector.load %arg17[%c30, %c512_89] : memref<32x1024xf32, #tpu.memory_space<vmem>>, vector<2x256xf32>
    %120 = arith.addf %118, %119 : vector<2x256xf32>
    %c0_90 = arith.constant 0 : index
    %c0_91 = arith.constant 0 : index
    %121 = vector.load %arg3[%c0_90, %c0_91] : memref<1x256xf32, #tpu.memory_space<vmem>>, vector<1x256xf32>
    %122 = vector.broadcast %121 : vector<1x256xf32> to vector<2x256xf32>
    %123 = arith.addf %120, %122 : vector<2x256xf32>
    %cst_92 = arith.constant 0.000000e+00 : f32
    %124 = vector.broadcast %cst_92 : f32 to vector<2x256xf32>
    %125 = arith.maximumf %123, %124 : vector<2x256xf32>
    %126 = arith.truncf %125 : vector<2x256xf32> to vector<2x256xbf16>
    %c14_93 = arith.constant 14 : index
    %c0_94 = arith.constant 0 : index
    %127 = vector.load %arg15[%c14_93, %c0_94] : memref<16x256xbf16, #tpu.memory_space<vmem>>, vector<2x256xbf16>
    tpu.vector_store %arg15[%c14_93, %c0_94], %126 {strides = array<i32>} : memref<16x256xbf16, #tpu.memory_space<vmem>>, vector<2x256xbf16>,
    %c0_95 = arith.constant 0 : index
    %c0_96 = arith.constant 0 : index
    %128 = vector.load %arg15[%c0_95, %c0_96] : memref<16x256xbf16, #tpu.memory_space<vmem>>, vector<16x256xbf16>
    %c0_97 = arith.constant 0 : index
    %c0_98 = arith.constant 0 : index
    %129 = vector.load %arg4[%c0_97, %c0_98] : memref<256x1024xbf16, #tpu.memory_space<vmem>>, vector<256x1024xbf16>
    %cst_99 = arith.constant dense<0.000000e+00> : vector<16x1024xf32>
    %130 = tpu.matmul %128, %129, %cst_99 {dimension_numbers = #tpu.dot_dimension_numbers<[1], [0], [0], [1], [0, 0, 1, 1], [], []>} : vector<16x256xbf16>, vector<256x1024xbf16>, vector<16x1024xf32> -> vector<16x1024xf32>
    %c0_100 = arith.constant 0 : index
    %c0_101 = arith.constant 0 : index
    %131 = vector.load %arg17[%c0_100, %c0_101] : memref<32x1024xf32, #tpu.memory_space<vmem>>, vector<16x1024xf32>
    tpu.vector_store %arg17[%c0_100, %c0_101], %130 {strides = array<i32>} : memref<32x1024xf32, #tpu.memory_space<vmem>>, vector<16x1024xf32>,
    %cst_102 = arith.constant 0.000000e+00 : f32
    %132 = vector.broadcast %cst_102 : f32 to vector<2x256xf32>
    %c0_103 = arith.constant 0 : index
    %c256_104 = arith.constant 256 : index
    %133 = vector.load %arg17[%c0_103, %c256_104] : memref<32x1024xf32, #tpu.memory_space<vmem>>, vector<2x256xf32>
    %134 = arith.addf %132, %133 : vector<2x256xf32>
    %c2_105 = arith.constant 2 : index
    %c512_106 = arith.constant 512 : index
    %135 = vector.load %arg17[%c2_105, %c512_106] : memref<32x1024xf32, #tpu.memory_space<vmem>>, vector<2x256xf32>
    %136 = arith.addf %134, %135 : vector<2x256xf32>
    %c4_107 = arith.constant 4 : index
    %c768_108 = arith.constant 768 : index
    %137 = vector.load %arg17[%c4_107, %c768_108] : memref<32x1024xf32, #tpu.memory_space<vmem>>, vector<2x256xf32>
    %138 = arith.addf %136, %137 : vector<2x256xf32>
    %c0_109 = arith.constant 0 : index
    %c0_110 = arith.constant 0 : index
    %139 = vector.load %arg5[%c0_109, %c0_110] : memref<1x256xf32, #tpu.memory_space<vmem>>, vector<1x256xf32>
    %140 = vector.broadcast %139 : vector<1x256xf32> to vector<2x256xf32>
    %141 = arith.addf %138, %140 : vector<2x256xf32>
    %cst_111 = arith.constant 0.000000e+00 : f32
    %142 = vector.broadcast %cst_111 : f32 to vector<2x256xf32>
    %143 = arith.maximumf %141, %142 : vector<2x256xf32>
    %144 = arith.truncf %143 : vector<2x256xf32> to vector<2x256xbf16>
    %c0_112 = arith.constant 0 : index
    %c0_113 = arith.constant 0 : index
    %145 = vector.load %arg16[%c0_112, %c0_113] : memref<8x256xbf16, #tpu.memory_space<vmem>>, vector<2x256xbf16>
    tpu.vector_store %arg16[%c0_112, %c0_113], %144 {strides = array<i32>} : memref<8x256xbf16, #tpu.memory_space<vmem>>, vector<2x256xbf16>,
    %cst_114 = arith.constant 0.000000e+00 : f32
    %146 = vector.broadcast %cst_114 : f32 to vector<2x256xf32>
    %c2_115 = arith.constant 2 : index
    %c0_116 = arith.constant 0 : index
    %147 = vector.load %arg17[%c2_115, %c0_116] : memref<32x1024xf32, #tpu.memory_space<vmem>>, vector<2x256xf32>
    %148 = arith.addf %146, %147 : vector<2x256xf32>
    %c4_117 = arith.constant 4 : index
    %c256_118 = arith.constant 256 : index
    %149 = vector.load %arg17[%c4_117, %c256_118] : memref<32x1024xf32, #tpu.memory_space<vmem>>, vector<2x256xf32>
    %150 = arith.addf %148, %149 : vector<2x256xf32>
    %c6_119 = arith.constant 6 : index
    %c512_120 = arith.constant 512 : index
    %151 = vector.load %arg17[%c6_119, %c512_120] : memref<32x1024xf32, #tpu.memory_space<vmem>>, vector<2x256xf32>
    %152 = arith.addf %150, %151 : vector<2x256xf32>
    %c8_121 = arith.constant 8 : index
    %c768_122 = arith.constant 768 : index
    %153 = vector.load %arg17[%c8_121, %c768_122] : memref<32x1024xf32, #tpu.memory_space<vmem>>, vector<2x256xf32>
    %154 = arith.addf %152, %153 : vector<2x256xf32>
    %c0_123 = arith.constant 0 : index
    %c0_124 = arith.constant 0 : index
    %155 = vector.load %arg5[%c0_123, %c0_124] : memref<1x256xf32, #tpu.memory_space<vmem>>, vector<1x256xf32>
    %156 = vector.broadcast %155 : vector<1x256xf32> to vector<2x256xf32>
    %157 = arith.addf %154, %156 : vector<2x256xf32>
    %cst_125 = arith.constant 0.000000e+00 : f32
    %158 = vector.broadcast %cst_125 : f32 to vector<2x256xf32>
    %159 = arith.maximumf %157, %158 : vector<2x256xf32>
    %160 = arith.truncf %159 : vector<2x256xf32> to vector<2x256xbf16>
    %c2_126 = arith.constant 2 : index
    %c0_127 = arith.constant 0 : index
    %161 = vector.load %arg16[%c2_126, %c0_127] : memref<8x256xbf16, #tpu.memory_space<vmem>>, vector<2x256xbf16>
    tpu.vector_store %arg16[%c2_126, %c0_127], %160 {strides = array<i32>} : memref<8x256xbf16, #tpu.memory_space<vmem>>, vector<2x256xbf16>,
    %cst_128 = arith.constant 0.000000e+00 : f32
    %162 = vector.broadcast %cst_128 : f32 to vector<2x256xf32>
    %c6_129 = arith.constant 6 : index
    %c0_130 = arith.constant 0 : index
    %163 = vector.load %arg17[%c6_129, %c0_130] : memref<32x1024xf32, #tpu.memory_space<vmem>>, vector<2x256xf32>
    %164 = arith.addf %162, %163 : vector<2x256xf32>
    %c8_131 = arith.constant 8 : index
    %c256_132 = arith.constant 256 : index
    %165 = vector.load %arg17[%c8_131, %c256_132] : memref<32x1024xf32, #tpu.memory_space<vmem>>, vector<2x256xf32>
    %166 = arith.addf %164, %165 : vector<2x256xf32>
    %c10_133 = arith.constant 10 : index
    %c512_134 = arith.constant 512 : index
    %167 = vector.load %arg17[%c10_133, %c512_134] : memref<32x1024xf32, #tpu.memory_space<vmem>>, vector<2x256xf32>
    %168 = arith.addf %166, %167 : vector<2x256xf32>
    %c12_135 = arith.constant 12 : index
    %c768_136 = arith.constant 768 : index
    %169 = vector.load %arg17[%c12_135, %c768_136] : memref<32x1024xf32, #tpu.memory_space<vmem>>, vector<2x256xf32>
    %170 = arith.addf %168, %169 : vector<2x256xf32>
    %c0_137 = arith.constant 0 : index
    %c0_138 = arith.constant 0 : index
    %171 = vector.load %arg5[%c0_137, %c0_138] : memref<1x256xf32, #tpu.memory_space<vmem>>, vector<1x256xf32>
    %172 = vector.broadcast %171 : vector<1x256xf32> to vector<2x256xf32>
    %173 = arith.addf %170, %172 : vector<2x256xf32>
    %cst_139 = arith.constant 0.000000e+00 : f32
    %174 = vector.broadcast %cst_139 : f32 to vector<2x256xf32>
    %175 = arith.maximumf %173, %174 : vector<2x256xf32>
    %176 = arith.truncf %175 : vector<2x256xf32> to vector<2x256xbf16>
    %c4_140 = arith.constant 4 : index
    %c0_141 = arith.constant 0 : index
    %177 = vector.load %arg16[%c4_140, %c0_141] : memref<8x256xbf16, #tpu.memory_space<vmem>>, vector<2x256xbf16>
    tpu.vector_store %arg16[%c4_140, %c0_141], %176 {strides = array<i32>} : memref<8x256xbf16, #tpu.memory_space<vmem>>, vector<2x256xbf16>,
    %cst_142 = arith.constant 0.000000e+00 : f32
    %178 = vector.broadcast %cst_142 : f32 to vector<2x256xf32>
    %c10_143 = arith.constant 10 : index
    %c0_144 = arith.constant 0 : index
    %179 = vector.load %arg17[%c10_143, %c0_144] : memref<32x1024xf32, #tpu.memory_space<vmem>>, vector<2x256xf32>
    %180 = arith.addf %178, %179 : vector<2x256xf32>
    %c12_145 = arith.constant 12 : index
    %c256_146 = arith.constant 256 : index
    %181 = vector.load %arg17[%c12_145, %c256_146] : memref<32x1024xf32, #tpu.memory_space<vmem>>, vector<2x256xf32>
    %182 = arith.addf %180, %181 : vector<2x256xf32>
    %c14_147 = arith.constant 14 : index
    %c512_148 = arith.constant 512 : index
    %183 = vector.load %arg17[%c14_147, %c512_148] : memref<32x1024xf32, #tpu.memory_space<vmem>>, vector<2x256xf32>
    %184 = arith.addf %182, %183 : vector<2x256xf32>
    %c0_149 = arith.constant 0 : index
    %c0_150 = arith.constant 0 : index
    %185 = vector.load %arg5[%c0_149, %c0_150] : memref<1x256xf32, #tpu.memory_space<vmem>>, vector<1x256xf32>
    %186 = vector.broadcast %185 : vector<1x256xf32> to vector<2x256xf32>
    %187 = arith.addf %184, %186 : vector<2x256xf32>
    %cst_151 = arith.constant 0.000000e+00 : f32
    %188 = vector.broadcast %cst_151 : f32 to vector<2x256xf32>
    %189 = arith.maximumf %187, %188 : vector<2x256xf32>
    %190 = arith.truncf %189 : vector<2x256xf32> to vector<2x256xbf16>
    %c6_152 = arith.constant 6 : index
    %c0_153 = arith.constant 0 : index
    %191 = vector.load %arg16[%c6_152, %c0_153] : memref<8x256xbf16, #tpu.memory_space<vmem>>, vector<2x256xbf16>
    tpu.vector_store %arg16[%c6_152, %c0_153], %190 {strides = array<i32>} : memref<8x256xbf16, #tpu.memory_space<vmem>>, vector<2x256xbf16>,
    %c0_154 = arith.constant 0 : index
    %c0_155 = arith.constant 0 : index
    %192 = vector.load %arg16[%c0_154, %c0_155] : memref<8x256xbf16, #tpu.memory_space<vmem>>, vector<8x256xbf16>
    %c0_156 = arith.constant 0 : index
    %c0_157 = arith.constant 0 : index
    %193 = vector.load %arg6[%c0_156, %c0_157] : memref<256x256xbf16, #tpu.memory_space<vmem>>, vector<256x256xbf16>
    %cst_158 = arith.constant dense<0.000000e+00> : vector<8x256xf32>
    %194 = tpu.matmul %192, %193, %cst_158 {dimension_numbers = #tpu.dot_dimension_numbers<[1], [0], [0], [1], [0, 0, 1, 1], [], []>} : vector<8x256xbf16>, vector<256x256xbf16>, vector<8x256xf32> -> vector<8x256xf32>
    %c0_159 = arith.constant 0 : index
    %c0_160 = arith.constant 0 : index
    %195 = vector.load %arg17[%c0_159, %c0_160] : memref<32x1024xf32, #tpu.memory_space<vmem>>, vector<8x256xf32>
    tpu.vector_store %arg17[%c0_159, %c0_160], %194 {strides = array<i32>} : memref<32x1024xf32, #tpu.memory_space<vmem>>, vector<8x256xf32>,
    %cst_161 = arith.constant 0.000000e+00 : f32
    %196 = vector.broadcast %cst_161 : f32 to vector<2x64xf32>
    %c0_162 = arith.constant 0 : index
    %c64 = arith.constant 64 : index
    %197 = vector.load %arg17[%c0_162, %c64] : memref<32x1024xf32, #tpu.memory_space<vmem>>, vector<2x64xf32>
    %198 = arith.addf %196, %197 : vector<2x64xf32>
    %c2_163 = arith.constant 2 : index
    %c128 = arith.constant 128 : index
    %199 = vector.load %arg17[%c2_163, %c128] : memref<32x1024xf32, #tpu.memory_space<vmem>>, vector<2x64xf32>
    %200 = arith.addf %198, %199 : vector<2x64xf32>
    %c4_164 = arith.constant 4 : index
    %c192 = arith.constant 192 : index
    %201 = vector.load %arg17[%c4_164, %c192] : memref<32x1024xf32, #tpu.memory_space<vmem>>, vector<2x64xf32>
    %202 = arith.addf %200, %201 : vector<2x64xf32>
    %c0_165 = arith.constant 0 : index
    %c0_166 = arith.constant 0 : index
    %203 = vector.load %arg7[%c0_165, %c0_166] : memref<1x64xf32, #tpu.memory_space<vmem>>, vector<1x64xf32>
    %204 = vector.broadcast %203 : vector<1x64xf32> to vector<2x64xf32>
    %205 = arith.addf %202, %204 : vector<2x64xf32>
    %cst_167 = arith.constant 0.000000e+00 : f32
    %206 = vector.broadcast %cst_167 : f32 to vector<2x64xf32>
    %207 = arith.maximumf %205, %206 : vector<2x64xf32>
    %cst_168 = arith.constant 0.000000e+00 : f32
    %208 = vector.broadcast %cst_168 : f32 to vector<2x64xf32>
    %c2_169 = arith.constant 2 : index
    %c0_170 = arith.constant 0 : index
    %209 = vector.load %arg17[%c2_169, %c0_170] : memref<32x1024xf32, #tpu.memory_space<vmem>>, vector<2x64xf32>
    %210 = arith.addf %208, %209 : vector<2x64xf32>
    %c4_171 = arith.constant 4 : index
    %c64_172 = arith.constant 64 : index
    %211 = vector.load %arg17[%c4_171, %c64_172] : memref<32x1024xf32, #tpu.memory_space<vmem>>, vector<2x64xf32>
    %212 = arith.addf %210, %211 : vector<2x64xf32>
    %c6_173 = arith.constant 6 : index
    %c128_174 = arith.constant 128 : index
    %213 = vector.load %arg17[%c6_173, %c128_174] : memref<32x1024xf32, #tpu.memory_space<vmem>>, vector<2x64xf32>
    %214 = arith.addf %212, %213 : vector<2x64xf32>
    %c0_175 = arith.constant 0 : index
    %c0_176 = arith.constant 0 : index
    %215 = vector.load %arg7[%c0_175, %c0_176] : memref<1x64xf32, #tpu.memory_space<vmem>>, vector<1x64xf32>
    %216 = vector.broadcast %215 : vector<1x64xf32> to vector<2x64xf32>
    %217 = arith.addf %214, %216 : vector<2x64xf32>
    %cst_177 = arith.constant 0.000000e+00 : f32
    %218 = vector.broadcast %cst_177 : f32 to vector<2x64xf32>
    %219 = arith.maximumf %217, %218 : vector<2x64xf32>
    %220 = tpu.concatenate %207, %219 in 1 : vector<2x64xf32>, vector<2x64xf32> -> vector<2x128xf32>
    %221 = arith.truncf %220 : vector<2x128xf32> to vector<2x128xbf16>
    %c0_178 = arith.constant 0 : index
    %c0_179 = arith.constant 0 : index
    %222 = vector.load %arg8[%c0_178, %c0_179] : memref<128x64xbf16, #tpu.memory_space<vmem>>, vector<128x64xbf16>
    %cst_180 = arith.constant dense<0.000000e+00> : vector<2x64xf32>
    %223 = tpu.matmul %221, %222, %cst_180 {dimension_numbers = #tpu.dot_dimension_numbers<[1], [0], [0], [1], [0, 0, 1, 1], [], []>} : vector<2x128xbf16>, vector<128x64xbf16>, vector<2x64xf32> -> vector<2x64xf32>
    %c0_181 = arith.constant 0 : index
    %c0_182 = arith.constant 0 : index
    %224 = vector.load %arg9[%c0_181, %c0_182] : memref<1x64xf32, #tpu.memory_space<vmem>>, vector<1x64xf32>
    %225 = vector.broadcast %224 : vector<1x64xf32> to vector<2x64xf32>
    %226 = arith.addf %223, %225 : vector<2x64xf32>
    %c0_183 = arith.constant 0 : index
    %c0_184 = arith.constant 0 : index
    %227 = vector.load %arg14[%c0_183, %c0_184] : memref<2x64xf32, #tpu.memory_space<vmem>>, vector<2x64xf32>
    tpu.vector_store %arg14[%c0_183, %c0_184], %226 {strides = array<i32>} : memref<2x64xf32, #tpu.memory_space<vmem>>, vector<2x64xf32>,
    %228 = vector.extract_strided_slice %226 {offsets = [0, 0], sizes = [2, 32], strides = [1, 1]} : vector<2x64xf32> to vector<2x32xf32>
    %229 = vector.extract_strided_slice %226 {offsets = [0, 32], sizes = [2, 32], strides = [1, 1]} : vector<2x64xf32> to vector<2x32xf32>
    %c0_185 = arith.constant 0 : index
    %c0_186 = arith.constant 0 : index
    %230 = vector.load %arg12[%c0_185, %c0_186] : memref<2x32xf32, #tpu.memory_space<vmem>>, vector<2x32xf32>
    %cst_187 = arith.constant 5.000000e-01 : f32
    %231 = vector.broadcast %cst_187 : f32 to vector<2x32xf32>
    %232 = arith.mulf %231, %229 : vector<2x32xf32>
    %233 = math.exp %232 : vector<2x32xf32>
    %234 = arith.mulf %230, %233 : vector<2x32xf32>
    %235 = arith.addf %228, %234 : vector<2x32xf32>
    %236 = arith.truncf %235 : vector<2x32xf32> to vector<2x32xbf16>
    %c0_188 = arith.constant 0 : index
    %c0_189 = arith.constant 0 : index
    %237 = vector.load %arg10[%c0_188, %c0_189] : memref<32x128xbf16, #tpu.memory_space<vmem>>, vector<32x128xbf16>
    %cst_190 = arith.constant dense<0.000000e+00> : vector<2x128xf32>
    %238 = tpu.matmul %236, %237, %cst_190 {dimension_numbers = #tpu.dot_dimension_numbers<[1], [0], [0], [1], [0, 0, 1, 1], [], []>} : vector<2x32xbf16>, vector<32x128xbf16>, vector<2x128xf32> -> vector<2x128xf32>
    %c0_191 = arith.constant 0 : index
    %c0_192 = arith.constant 0 : index
    %239 = vector.load %arg11[%c0_191, %c0_192] : memref<1x128xf32, #tpu.memory_space<vmem>>, vector<1x128xf32>
    %240 = vector.broadcast %239 : vector<1x128xf32> to vector<2x128xf32>
    %241 = arith.addf %238, %240 : vector<2x128xf32>
    %c0_193 = arith.constant 0 : index
    %c0_194 = arith.constant 0 : index
    %242 = vector.load %arg13[%c0_193, %c0_194] : memref<2x128xf32, #tpu.memory_space<vmem>>, vector<2x128xf32>
    tpu.vector_store %arg13[%c0_193, %c0_194], %241 {strides = array<i32>} : memref<2x128xf32, #tpu.memory_space<vmem>>, vector<2x128xf32>,
    return
  }
  func.func @transform_0(%arg0: i32) -> (i32, i32) {
    %c0_i32 = arith.constant 0 : i32
    %c0_i32_0 = arith.constant 0 : i32
    %c0_i32_1 = arith.constant 0 : i32
    return %c0_i32, %c0_i32_0 : i32, i32
  }
  func.func @transform_1(%arg0: i32) -> (i32, i32) {
    %c0_i32 = arith.constant 0 : i32
    %c0_i32_0 = arith.constant 0 : i32
    %c0_i32_1 = arith.constant 0 : i32
    return %c0_i32, %c0_i32_0 : i32, i32
  }
  func.func @transform_2(%arg0: i32) -> (i32, i32) {
    %c0_i32 = arith.constant 0 : i32
    %c0_i32_0 = arith.constant 0 : i32
    %c0_i32_1 = arith.constant 0 : i32
    return %c0_i32, %c0_i32_0 : i32, i32
  }
  func.func @transform_3(%arg0: i32) -> (i32, i32) {
    %c0_i32 = arith.constant 0 : i32
    %c0_i32_0 = arith.constant 0 : i32
    %c0_i32_1 = arith.constant 0 : i32
    return %c0_i32, %c0_i32_0 : i32, i32
  }
  func.func @transform_4(%arg0: i32) -> (i32, i32) {
    %c0_i32 = arith.constant 0 : i32
    %c0_i32_0 = arith.constant 0 : i32
    %c0_i32_1 = arith.constant 0 : i32
    return %c0_i32, %c0_i32_0 : i32, i32
  }
  func.func @transform_5(%arg0: i32) -> (i32, i32) {
    %c0_i32 = arith.constant 0 : i32
    %c0_i32_0 = arith.constant 0 : i32
    %c0_i32_1 = arith.constant 0 : i32
    return %c0_i32, %c0_i32_0 : i32, i32
  }
  func.func @transform_6(%arg0: i32) -> (i32, i32) {
    %c0_i32 = arith.constant 0 : i32
    %c0_i32_0 = arith.constant 0 : i32
    %c0_i32_1 = arith.constant 0 : i32
    return %c0_i32, %c0_i32_0 : i32, i32
  }
  func.func @transform_7(%arg0: i32) -> (i32, i32) {
    %c0_i32 = arith.constant 0 : i32
    %c0_i32_0 = arith.constant 0 : i32
    %c0_i32_1 = arith.constant 0 : i32
    return %c0_i32, %c0_i32_0 : i32, i32
  }
  func.func @transform_8(%arg0: i32) -> (i32, i32) {
    %c0_i32 = arith.constant 0 : i32
    %c0_i32_0 = arith.constant 0 : i32
    %c0_i32_1 = arith.constant 0 : i32
    return %c0_i32, %c0_i32_0 : i32, i32
  }
  func.func @transform_9(%arg0: i32) -> (i32, i32) {
    %c0_i32 = arith.constant 0 : i32
    %c0_i32_0 = arith.constant 0 : i32
    %c0_i32_1 = arith.constant 0 : i32
    return %c0_i32, %c0_i32_0 : i32, i32
  }
  func.func @transform_10(%arg0: i32) -> (i32, i32) {
    %c0_i32 = arith.constant 0 : i32
    %c0_i32_0 = arith.constant 0 : i32
    %c0_i32_1 = arith.constant 0 : i32
    return %c0_i32, %c0_i32_0 : i32, i32
  }
  func.func @transform_11(%arg0: i32) -> (i32, i32) {
    %c0_i32 = arith.constant 0 : i32
    %c0_i32_0 = arith.constant 0 : i32
    %c0_i32_1 = arith.constant 0 : i32
    return %c0_i32, %c0_i32_0 : i32, i32
  }
  func.func @transform_12(%arg0: i32) -> (i32, i32) {
    %c0_i32 = arith.constant 0 : i32
    %c0_i32_0 = arith.constant 0 : i32
    %c0_i32_1 = arith.constant 0 : i32
    return %c0_i32, %c0_i32_0 : i32, i32
  }
  func.func @transform_13(%arg0: i32) -> (i32, i32) {
    %c0_i32 = arith.constant 0 : i32
    %c0_i32_0 = arith.constant 0 : i32
    %c0_i32_1 = arith.constant 0 : i32
    return %c0_i32, %c0_i32_0 : i32, i32
  }
}

</mosaic_0001>

<bundles_post_ra>
// kernel: _lambda_.1
= control target key start
LH: loop header
LB: loop body
LE: loop exit
PB: predicated region body
PF: predicated region fallthrough
CT: control target
= control target key end

     0   :  { %19 = vsyncpa [#allocation6], 0  ;;  %s3377_s0 = inlined_call_operand.vmem [shape: bf16[32,16], index: 0, kind: input, shape index: {}]   ;;  %s3378_s1 = inlined_call_operand.vmem [shape: bf16[16,1024], index: 1, kind: input, shape index: {}]   ;;  %s3379_s2 = inlined_call_operand.vmem [shape: f32[1,256], index: 2, kind: input, shape index: {}]   ;;  %s3380_s3 = inlined_call_operand.hbm [shape: bf16[256,1024], index: 3, kind: input, shape index: {}]   ;;  %s3381_s4 = inlined_call_operand.vmem [shape: f32[1,256], index: 4, kind: input, shape index: {}]   ;;  %s3382_s5 = inlined_call_operand.hbm [shape: bf16[256,256], index: 5, kind: input, shape index: {}]   ;;  %s3383_s6 = inlined_call_operand.vmem [shape: f32[1,64], index: 6, kind: input, shape index: {}]   ;;  %s3384_s7 = inlined_call_operand.vmem [shape: bf16[128,64], index: 7, kind: input, shape index: {}]   ;;  %s3385_s8 = inlined_call_operand.vmem [shape: f32[1,64], index: 8, kind: input, shape index: {}]   ;;  %s3386_s9 = inlined_call_operand.vmem [shape: bf16[32,128], index: 9, kind: input, shape index: {}]   ;;  %s3387_s10 = inlined_call_operand.vmem [shape: f32[1,128], index: 10, kind: input, shape index: {}]   ;;  %s3388_s11 = inlined_call_operand.vmem [shape: f32[2,32], index: 11, kind: input, shape index: {}]   ;;  %s3389_s12 = inlined_call_operand.vmem [shape: f32[2,128], index: 12, kind: output, shape index: {0}]   ;;  %s3390_s13 = inlined_call_operand.vmem [shape: f32[2,64], index: 13, kind: output, shape index: {1}]  }
   0x1   :  { %20 = vsyncpa [#allocation8], 0  ;;  %s2922_s25 = smov [#allocation5]  }
   0x2   :  { %s32_s26 = sshll.u32 %s2922_s25, 4  ;;  %s33_s26 = int_to_ptr.vmem [resolvable:$true] %s32_s26 }
   0x3   :  { %s2886_s27 = scalar_lea.vmem %s33_s26, 16384  ;;  %p2891_p1 = scmp.lt.s32.totalorder %s33_s26, %s33_s26 }
   0x4   :  { %p2887_p0 = scmp.ne.s32.totalorder %s33_s26, %s2886_s27  ;;  %p2892_p2 = scmp.lt.s32.totalorder %s2886_s27, %s2886_s27 }
   0x6   :  { %p2893_p3 = por %p2892_p2, %p2891_p1 }
   0x8   :  { %p2894_p4 = pnand %p2893_p3, %p2887_p0 }
   0xa   :  { %2897 = shalt.err (!%p2894_p4)
}
   0xb   :  { %s2923_s28 = smov 512   ;;  %s2924_s29 = smov 32  }
   0xc   :  { %38 = dma.hbm_to_vmem [thread:$0]  %s3380_s3, 16384, %s33_s26, [#allocation6], %s2923_s28, %s2923_s28, %s2924_s29  }
   0xd   :  { %s2925_s15 = smov [#allocation7]  }
   0xe   :  { %s46_s16 = sshll.u32 %s2925_s15, 4  ;;  %s47_s16 = int_to_ptr.vmem [resolvable:$true] %s46_s16 }
   0xf   :  { %s2906_s17 = scalar_lea.vmem %s47_s16, 4096  ;;  %p2911_p6 = scmp.lt.s32.totalorder %s47_s16, %s47_s16 }
  0x10   :  { %p2907_p5 = scmp.ne.s32.totalorder %s47_s16, %s2906_s17  ;;  %p2912_p7 = scmp.lt.s32.totalorder %s2906_s17, %s2906_s17 }
  0x12   :  { %p2913_p8 = por %p2912_p7, %p2911_p6 }
  0x14   :  { %p2914_p9 = pnand %p2913_p8, %p2907_p5 }
  0x16   :  { %2917 = shalt.err (!%p2914_p9)
}
  0x17   :  { %s2926_s18 = smov 128   ;;  %s2927_s19 = smov 8  }
  0x18   :  { %52 = dma.hbm_to_vmem [thread:$0]  %s3382_s5, 4096, %s47_s16, [#allocation8], %s2926_s18, %s2926_s18, %s2927_s19  }
  0x19   :  { %2918 = dma.done.wait [#allocation6], 16384  }
  0x1a   :  { %2919 = vsyncadd [#allocation6], 4294950912 }
  0x1b   :  { %2920 = dma.done.wait [#allocation8], 4096  }
  0x1c   :  { %2921 = vsyncadd [#allocation8], 4294963200  ;;  %v2928_v0 = vmov 0   ;;  %v76_v1 = vld [vmem:[%s3378_s1] sm:$0xff]  ;;  %v77_v5 = vld [vmem:[%s3378_s1 + $0x8] sm:$0xff]  ;;  %vm134_vm0 = vcmask 130048  }
  0x1d   :  { %173 = vmatprep.mubr.bf16.mxu1 %v2928_v0  ;;  %279 = vmatprep.mubr.bf16.mxu0 %v2928_v0  ;;  %v80_v2 = vld [vmem:[%s3378_s1 + $0x20] sm:$0xff]  ;;  %v81_v6 = vld [vmem:[%s3378_s1 + $0x28] sm:$0xff]  ;;  %v78_v9 = vld [vmem:[%s3378_s1 + $0x10] sm:$0xff]  ;;  %s2929_s23 = smov 64   ;;  %vm2931_vm1 = vmmov 0   ;;  %vm2326_vm2 = vcmask 523264  }
  0x1e   :  { %v2534_v3 = vcombine.high %v76_v1, %v80_v2  ;;  %v2533_v4 = vcombine.low %v76_v1, %v80_v2  ;;  %v2811_v7 = vld [vmem:[%s3377_s0] sm:$0xff]   ;;  %v2536_v8 = vcombine.high %v77_v5, %v81_v6  ;;  %v82_v10 = vld [vmem:[%s3378_s1 + $0x30] sm:$0xff]  ;;  %v2535_v11 = vcombine.low %v77_v5, %v81_v6  ;;  %v79_v14 = vld [vmem:[%s3378_s1 + $0x18] sm:$0xff] }
  0x1f   :  { %v2538_v12 = vcombine.high %v78_v9, %v82_v10  ;;  %v2537_v13 = vcombine.low %v78_v9, %v82_v10  ;;  %v83_v15 = vld [vmem:[%s3378_s1 + $0x38] sm:$0xff]  ;;  %v2812_v17 = vld [vmem:[%s3377_s0 + $0x8] sm:$0xff]   ;;  %v904_v21 = vld [vmem:[#allocation5 + $0x1c8] sm:$0xff]  ;;  %vm2440_vm3 = vcmask 517120   ;;  %vm2476_vm4 = vcmask 261120  }
  0x20   :  { %155 = vmatprep.subr.bf16.mxu1 %v2534_v3  ;;  %v2540_v16 = vcombine.high %v79_v14, %v83_v15  ;;  %v2539_v18 = vcombine.low %v79_v14, %v83_v15  ;;  %v903_v19 = vld [vmem:[#allocation5 + $0x1c0] sm:$0xff]  ;;  %v908_v23 = vld [vmem:[#allocation5 + $0x1e8] sm:$0xff] }
  0x21   :  { %156 = vmatpush1.bf16.msra.mxu1 %v2533_v4  ;;  %261 = vmatprep.subr.bf16.mxu0 %v2538_v12  ;;  %v907_v20 = vld [vmem:[#allocation5 + $0x1e0] sm:$0xff]  ;;  %v2620_v25 = vcombine.low %v904_v21, %v908_v23  ;;  %v2621_v26 = vcombine.high %v904_v21, %v908_v23  ;;  %v896_v29 = vld [vmem:[#allocation5 + $0x188] sm:$0xff] }
  0x22   :  { %208 = vmatprep.subr.bf16.mxu1 %v2536_v8  ;;  %262 = vmatpush1.bf16.msra.mxu0 %v2537_v13  ;;  %v2619_v22 = vcombine.high %v903_v19, %v907_v20  ;;  %v2618_v24 = vcombine.low %v903_v19, %v907_v20  ;;  %v895_v27 = vld [vmem:[#allocation5 + $0x180] sm:$0xff]  ;;  %v900_v31 = vld [vmem:[#allocation5 + $0x1a8] sm:$0xff] }
  0x23   :  { %v899_v28 = vld [vmem:[#allocation5 + $0x1a0] sm:$0xff]  ;;  %v2612_v33 = vcombine.low %v896_v29, %v900_v31  ;;  %v2613_v34 = vcombine.high %v896_v29, %v900_v31  ;;  %v888_v37 = vld [vmem:[#allocation5 + $0x148] sm:$0xff] }
  0x24   :  { %2541 = vmatmul.mubr.msk.bf16.vlgmr.msra.gmra.mxu1 %vm134_vm0, %v2811_v7  ;;  %1625 = vmatprep.subr.bf16.mxu0 %v2619_v22  ;;  %v2611_v30 = vcombine.high %v895_v27, %v899_v28  ;;  %v2610_v32 = vcombine.low %v895_v27, %v899_v28  ;;  %v887_v35 = vld [vmem:[#allocation5 + $0x140] sm:$0xff]  ;;  %v892_v39 = vld [vmem:[#allocation5 + $0x168] sm:$0xff] }
  0x25   :  { %209 = vmatpush1.bf16.msra.mxu1 %v2535_v11  ;;  %183 = vmatprep.mubr.bf16.mxu1 %v2928_v0  ;;  %v891_v36 = vld [vmem:[#allocation5 + $0x160] sm:$0xff]  ;;  %v2604_v41 = vcombine.low %v888_v37, %v892_v39  ;;  %v2605_v42 = vcombine.high %v888_v37, %v892_v39  ;;  %v880_v45 = vld [vmem:[#allocation5 + $0x108] sm:$0xff] }
  0x26   :  { %314 = vmatprep.subr.bf16.mxu1 %v2540_v16  ;;  %2545 = vmatmul.mubr.msk.bf16.vlgmr.msra.gmra.mxu0 %vm134_vm0, %v2811_v7  ;;  %v2603_v38 = vcombine.high %v887_v35, %v891_v36  ;;  %v2602_v40 = vcombine.low %v887_v35, %v891_v36  ;;  %v879_v43 = vld [vmem:[#allocation5 + $0x100] sm:$0xff]  ;;  %v884_v47 = vld [vmem:[#allocation5 + $0x128] sm:$0xff] }
  0x27   :  { %289 = vmatprep.mubr.bf16.mxu0 %v2928_v0  ;;  %1626 = vmatpush1.bf16.msra.mxu0 %v2618_v24  ;;  %v883_v44 = vld [vmem:[#allocation5 + $0x120] sm:$0xff]  ;;  %v2596_v49 = vcombine.low %v880_v45, %v884_v47  ;;  %v2597_v50 = vcombine.high %v880_v45, %v884_v47  ;;  %v872_v53 = vld [vmem:[#allocation5 + $0xc8] sm:$0xff] }
  0x28   :  { %1627 = vmatprep.subr.bf16.mxu0 %v2611_v30  ;;  %v2595_v46 = vcombine.high %v879_v43, %v883_v44  ;;  %v2594_v48 = vcombine.low %v879_v43, %v883_v44  ;;  %v871_v51 = vld [vmem:[#allocation5 + $0xc0] sm:$0xff]  ;;  %v876_v55 = vld [vmem:[#allocation5 + $0xe8] sm:$0xff] }
  0x29   :  { %v875_v52 = vld [vmem:[#allocation5 + $0xe0] sm:$0xff]  ;;  %v2588_v57 = vcombine.low %v872_v53, %v876_v55  ;;  %v2589_v58 = vcombine.high %v872_v53, %v876_v55  ;;  %v864_v61 = vld [vmem:[#allocation5 + $0x88] sm:$0xff] }
  0x2a   :  { %v2587_v54 = vcombine.high %v871_v51, %v875_v52  ;;  %v2586_v56 = vcombine.low %v871_v51, %v875_v52  ;;  %v863_v59 = vld [vmem:[#allocation5 + $0x80] sm:$0xff]  ;;  %v868_v63 = vld [vmem:[#allocation5 + $0xa8] sm:$0xff] }
  0x2b   :  { %1628 = vmatpush1.bf16.msra.mxu0 %v2610_v32  ;;  %v867_v60 = vld [vmem:[#allocation5 + $0xa0] sm:$0xff]  ;;  %v2580_v1 = vcombine.low %v864_v61, %v868_v63  ;;  %v2581_v2 = vcombine.high %v864_v61, %v868_v63  ;;  %v856_v5 = vld [vmem:[#allocation5 + $0x48] sm:$0xff] }
  0x2c   :  { %2542 = vmatmul.mubr.msk.bf16.gmra.mxu1 %vm134_vm0, %v2812_v17  ;;  %1629 = vmatprep.subr.bf16.mxu0 %v2603_v38  ;;  %v2579_v62 = vcombine.high %v863_v59, %v867_v60  ;;  %v855_v3 = vld [vmem:[#allocation5 + $0x40] sm:$0xff]  ;;  %v848_v13 = vld [vmem:[#allocation5 + $0x8] sm:$0xff] }
  0x2d   :  { %226 = vmatprep.mubr.bf16.mxu1 %v2928_v0  ;;  %v859_v4 = vld [vmem:[#allocation5 + $0x60] sm:$0xff]  ;;  %v852_v15 = vld [vmem:[#allocation5 + $0x28] sm:$0xff] }
  0x2e   :  { %2546 = vmatmul.mubr.msk.bf16.gmra.mxu0 %vm134_vm0, %v2812_v17  ;;  %v2571_v6 = vcombine.high %v855_v3, %v859_v4  ;;  %v2570_v8 = vcombine.low %v855_v3, %v859_v4  ;;  %v847_v11 = vld [vmem:[#allocation5] sm:$0xff]  ;;  %v968_v22 = vld [vmem:[#allocation5 + $0x3c8] sm:$0xff] }
  0x2f   :  { %1630 = vmatpush1.bf16.msra.mxu0 %v2602_v40  ;;  %v851_v12 = vld [vmem:[#allocation5 + $0x20] sm:$0xff]  ;;  %v972_v23 = vld [vmem:[#allocation5 + $0x3e8] sm:$0xff] }
  0x30   :  { %1631 = vmatprep.subr.bf16.mxu0 %v2595_v46  ;;  %v2563_v14 = vcombine.high %v847_v11, %v851_v12  ;;  %v2562_v16 = vcombine.low %v847_v11, %v851_v12  ;;  %v967_v19 = vld [vmem:[#allocation5 + $0x3c0] sm:$0xff]  ;;  %v960_v29 = vld [vmem:[#allocation5 + $0x388] sm:$0xff] }
  0x31   :  { %v971_v20 = vld [vmem:[#allocation5 + $0x3e0] sm:$0xff]  ;;  %v964_v30 = vld [vmem:[#allocation5 + $0x3a8] sm:$0xff] }
  0x32   :  { %v2683_v21 = vcombine.high %v967_v19, %v971_v20  ;;  %v2682_v24 = vcombine.low %v967_v19, %v971_v20  ;;  %v959_v27 = vld [vmem:[#allocation5 + $0x380] sm:$0xff]  ;;  %v952_v37 = vld [vmem:[#allocation5 + $0x348] sm:$0xff]  ;;  %v3047_v19 = vld [vmem:[#allocation5 + $0x1d0] sm:$0xff] }
  0x33   :  { %1632 = vmatpush1.bf16.msra.mxu0 %v2594_v48  ;;  %v963_v28 = vld [vmem:[#allocation5 + $0x3a0] sm:$0xff]  ;;  %v956_v38 = vld [vmem:[#allocation5 + $0x368] sm:$0xff]  ;;  %v3049_v20 = vld [vmem:[#allocation5 + $0x1f0] sm:$0xff] }
  0x34   :  { %2543 = vmatmul.mubr.msk.bf16.vlgmr.msra.gmra.mxu1 %vm134_vm0, %v2811_v7  ;;  %1633 = vmatprep.subr.bf16.mxu0 %v2587_v54  ;;  %v2674_v31 = vcombine.low %v959_v27, %v963_v28  ;;  %v2675_v32 = vcombine.high %v959_v27, %v963_v28  ;;  %v951_v35 = vld [vmem:[#allocation5 + $0x340] sm:$0xff]  ;;  %v944_v45 = vld [vmem:[#allocation5 + $0x308] sm:$0xff] }
  0x35   :  { %315 = vmatpush1.bf16.msra.mxu1 %v2539_v18  ;;  %236 = vmatprep.mubr.bf16.mxu1 %v2928_v0  ;;  %v2565_v18 = vcombine.high %v848_v13, %v852_v15  ;;  %v955_v36 = vld [vmem:[#allocation5 + $0x360] sm:$0xff]  ;;  %v948_v47 = vld [vmem:[#allocation5 + $0x328] sm:$0xff] }
  0x36   :  { %1668 = vmatprep.subr.bf16.mxu1 %v2621_v26  ;;  %v2685_v26 = vcombine.high %v968_v22, %v972_v23  ;;  %v2666_v39 = vcombine.low %v951_v35, %v955_v36  ;;  %v2667_v40 = vcombine.high %v951_v35, %v955_v36  ;;  %v943_v43 = vld [vmem:[#allocation5 + $0x300] sm:$0xff]  ;;  %v936_v53 = vld [vmem:[#allocation5 + $0x2c8] sm:$0xff] }
  0x37   :  { %1634 = vmatpush1.bf16.msra.mxu0 %v2586_v56  ;;  %v947_v44 = vld [vmem:[#allocation5 + $0x320] sm:$0xff]  ;;  %v940_v55 = vld [vmem:[#allocation5 + $0x2e8] sm:$0xff] }
  0x38   :  { %1635 = vmatprep.subr.bf16.mxu0 %v2579_v62  ;;  %v2659_v46 = vcombine.high %v943_v43, %v947_v44  ;;  %v2658_v48 = vcombine.low %v943_v43, %v947_v44  ;;  %v935_v51 = vld [vmem:[#allocation5 + $0x2c0] sm:$0xff]  ;;  %v928_v61 = vld [vmem:[#allocation5 + $0x288] sm:$0xff] }
  0x39   :  { %v939_v52 = vld [vmem:[#allocation5 + $0x2e0] sm:$0xff]  ;;  %v932_v63 = vld [vmem:[#allocation5 + $0x2a8] sm:$0xff] }
  0x3a   :  { %v2651_v54 = vcombine.high %v935_v51, %v939_v52  ;;  %v2650_v56 = vcombine.low %v935_v51, %v939_v52  ;;  %v919_v3 = vld [vmem:[#allocation5 + $0x240] sm:$0xff]  ;;  %v3072_v52 = vld [vmem:[%s3379_s2] sm:$0x3] }
  0x3b   :  { %v923_v4 = vld [vmem:[#allocation5 + $0x260] sm:$0xff] }
  0x3c   :  { %2544 = vmatmul.mubr.msk.bf16.gmra.mxu1 %vm134_vm0, %v2812_v17  ;;  %v911_v11 = vld [vmem:[#allocation5 + $0x200] sm:$0xff] }
  0x3d   :  { %332 = vmatprep.mubr.bf16.mxu1 %v2928_v0  ;;  %v915_v12 = vld [vmem:[#allocation5 + $0x220] sm:$0xff] }
  0x44   :  { %2547 = vmatmul.mubr.msk.bf16.vlgmr.msra.gmra.mxu1 %vm134_vm0, %v2811_v7  ;;  %v860_v7 = vld [vmem:[#allocation5 + $0x68] sm:$0xff] }
  0x45   :  { %342 = vmatprep.mubr.bf16.mxu1 %v2928_v0  ;;  %1669 = vmatpush1.bf16.msra.mxu1 %v2620_v25  ;;  %v2578_v0 = vcombine.low %v863_v59, %v867_v60  ;;  %v2572_v9 = vcombine.low %v856_v5, %v860_v7  ;;  %v2573_v10 = vcombine.high %v856_v5, %v860_v7  ;;  %v927_v59 = vld [vmem:[#allocation5 + $0x280] sm:$0xff]  ;;  %v920_v5 = vld [vmem:[#allocation5 + $0x248] sm:$0xff] }
  0x46   :  { %1670 = vmatprep.subr.bf16.mxu1 %v2613_v34  ;;  %v2684_v25 = vcombine.low %v968_v22, %v972_v23  ;;  %v2677_v34 = vcombine.high %v960_v29, %v964_v30  ;;  %v931_v60 = vld [vmem:[#allocation5 + $0x2a0] sm:$0xff]  ;;  %v924_v7 = vld [vmem:[#allocation5 + $0x268] sm:$0xff]  ;;  %v2623_v22 = vcombine.high %v3047_v19, %v3049_v20  ;;  %v3055_v23 = vld [vmem:[#allocation5 + $0x1f8] sm:$0xff] }
  0x47   :  { %1636 = vmatpush1.bf16.msra.mxu0 %v2578_v0  ;;  %v2643_v62 = vcombine.high %v927_v59, %v931_v60  ;;  %v2642_v0 = vcombine.low %v927_v59, %v931_v60  ;;  %3392 = vst [vmem:[#allocation11_spill] sm:$0xff] %v3055_v23  ;;  %v3092_v60 = vld [vmem:[%s3379_s2] sm:$0x3] }
  0x48   :  { %1637 = vmatprep.subr.bf16.mxu0 %v2571_v6  ;;  %v2635_v6 = vcombine.high %v919_v3, %v923_v4 }
  0x49   :  { %1671 = vmatpush1.bf16.msra.mxu1 %v2612_v33  ;;  %v2676_v33 = vcombine.low %v960_v29, %v964_v30 }
  0x4a   :  { %1672 = vmatprep.subr.bf16.mxu1 %v2605_v42  ;;  %v2669_v42 = vcombine.high %v952_v37, %v956_v38 }
  0x4b   :  { %1638 = vmatpush1.bf16.msra.mxu0 %v2570_v8  ;;  %v2634_v8 = vcombine.low %v919_v3, %v923_v4 }
  0x4c   :  { %2548 = vmatmul.mubr.msk.bf16.gmra.mxu1 %vm134_vm0, %v2812_v17  ;;  %v2564_v17 = vcombine.low %v848_v13, %v852_v15  ;;  %1639 = vmatprep.subr.bf16.mxu0 %v2563_v14  ;;  %v912_v13 = vld [vmem:[#allocation5 + $0x208] sm:$0xff]  ;;  %v2627_v14 = vcombine.high %v911_v11, %v915_v12 }
  0x4d   :  { %1673 = vmatpush1.bf16.msra.mxu1 %v2604_v41  ;;  %v2668_v41 = vcombine.low %v952_v37, %v956_v38  ;;  %v916_v15 = vld [vmem:[#allocation5 + $0x228] sm:$0xff] }
  0x4e   :  { %1674 = vmatprep.subr.bf16.mxu1 %v2597_v50  ;;  %v2661_v50 = vcombine.high %v944_v45, %v948_v47 }
  0x4f   :  { %1640 = vmatpush1.bf16.msra.mxu0 %v2562_v16  ;;  %v2629_v16 = vcombine.high %v912_v13, %v916_v15 }
  0x50   :  { %1641 = vmatprep.subr.bf16.mxu0 %v2683_v21  ;;  %v3051_v21 = vld [vmem:[#allocation5 + $0x1d8] sm:$0xff] }
  0x51   :  { %1675 = vmatpush1.bf16.msra.mxu1 %v2596_v49  ;;  %v2660_v49 = vcombine.low %v944_v45, %v948_v47 }
  0x52   :  { %1676 = vmatprep.subr.bf16.mxu1 %v2589_v58  ;;  %v2653_v58 = vcombine.high %v936_v53, %v940_v55 }
  0x53   :  { %1642 = vmatpush2.bf16.msra.mxu0 %v2682_v24 }
  0x54   :  { %1643 = vmatprep.subr.bf16.mxu0 %v2675_v32 }
  0x55   :  { %1677 = vmatpush1.bf16.msra.mxu1 %v2588_v57  ;;  %v2652_v57 = vcombine.low %v936_v53, %v940_v55 }
  0x56   :  { %1678 = vmatprep.subr.bf16.mxu1 %v2581_v2  ;;  %v2645_v2 = vcombine.high %v928_v61, %v932_v63 }
  0x57   :  { %1644 = vmatpush2.bf16.msra.mxu0 %v2674_v31 }
  0x58   :  { %1645 = vmatprep.subr.bf16.mxu0 %v2667_v40 }
  0x59   :  { %1679 = vmatpush1.bf16.msra.mxu1 %v2580_v1  ;;  %v2644_v1 = vcombine.low %v928_v61, %v932_v63  ;;  %v3097_v61 = vld [vmem:[%s3379_s2] sm:$0x3] }
  0x5a   :  { %1680 = vmatprep.subr.bf16.mxu1 %v2573_v10  ;;  %v2637_v10 = vcombine.high %v920_v5, %v924_v7 }
  0x5b   :  { %1646 = vmatpush2.bf16.msra.mxu0 %v2666_v39 }
  0x5c   :  { %1647 = vmatprep.subr.bf16.mxu0 %v2659_v46 }
  0x5d   :  { %1681 = vmatpush1.bf16.msra.mxu1 %v2572_v9  ;;  %v2636_v9 = vcombine.low %v920_v5, %v924_v7  ;;  %v3114_v7 = vld [vmem:[%s3379_s2] sm:$0x3] }
  0x5e   :  { %1682 = vmatprep.subr.bf16.mxu1 %v2565_v18  ;;  %v2628_v18 = vcombine.low %v912_v13, %v916_v15 }
  0x5f   :  { %1648 = vmatpush2.bf16.msra.mxu0 %v2658_v48 }
  0x60   :  { %1649 = vmatprep.subr.bf16.mxu0 %v2651_v54 }
  0x61   :  { %1683 = vmatpush1.bf16.msra.mxu1 %v2564_v17  ;;  %v2626_v17 = vcombine.low %v911_v11, %v915_v12 }
  0x62   :  { %1684 = vmatprep.subr.bf16.mxu1 %v2685_v26  ;;  %v2625_v26 = vcombine.high %v3051_v21, %v3055_v23 }
  0x63   :  { %1650 = vmatpush2.bf16.msra.mxu0 %v2650_v56  ;;  %v3083_v56 = vld [vmem:[%s3379_s2] sm:$0x3] }
  0x64   :  { %1651 = vmatprep.subr.bf16.mxu0 %v2643_v62 }
  0x65   :  { %1685 = vmatpush2.bf16.msra.mxu1 %v2684_v25 }
  0x66   :  { %1686 = vmatprep.subr.bf16.mxu1 %v2677_v34 }
  0x67   :  { %1652 = vmatpush2.bf16.msra.mxu0 %v2642_v0 }
  0x68   :  { %1653 = vmatprep.subr.bf16.mxu0 %v2635_v6 }
  0x69   :  { %1687 = vmatpush2.bf16.msra.mxu1 %v2676_v33 }
  0x6a   :  { %1688 = vmatprep.subr.bf16.mxu1 %v2669_v42 }
  0x6b   :  { %1654 = vmatpush2.bf16.msra.mxu0 %v2634_v8  ;;  %v3119_v8 = vld [vmem:[%s3379_s2] sm:$0x3] }
  0x6c   :  { %1655 = vmatprep.subr.bf16.mxu0 %v2627_v14 }
  0x6d   :  { %1689 = vmatpush2.bf16.msra.mxu1 %v2668_v41  ;;  %v411_v41 = vlaneseq }
  0x6e   :  { %1690 = vmatprep.subr.bf16.mxu1 %v2661_v50 }
  0x6f   :  { %1656 = vmatpush2.bf16.msra.mxu0 %v2626_v17  ;;  %v412_v46 = vshrl.u32 %v411_v41, 7 }
  0x70   :  { %1711 = vmatprep.subr.bf16.mxu0 %v2623_v22 }
  0x71   :  { %1691 = vmatpush2.bf16.msra.mxu1 %v2660_v49  ;;  %v3067_v51 = vsub.s32 0, %v412_v46  ;;  %v3074_v53 = vsub.s32 1, %v412_v46 }
  0x72   :  { %1692 = vmatprep.subr.bf16.mxu1 %v2653_v58 }
  0x75   :  { %1693 = vmatpush2.bf16.msra.mxu1 %v2652_v57 }
  0x76   :  { %1694 = vmatprep.subr.bf16.mxu1 %v2645_v2 }
  0x79   :  { %1695 = vmatpush2.bf16.msra.mxu1 %v2644_v1 }
  0x7a   :  { %1696 = vmatprep.subr.bf16.mxu1 %v2637_v10 }
  0x7d   :  { %1697 = vmatpush2.bf16.msra.mxu1 %v2636_v9 }
  0x7e   :  { %1698 = vmatprep.subr.bf16.mxu1 %v2629_v16 }
  0x81   :  { %1699 = vmatpush2.bf16.msra.mxu1 %v2628_v18 }
  0x82   :  { %1754 = vmatprep.subr.bf16.mxu1 %v2625_v26 }
  0xe4   :  { %v175_v27 = vpop.f32.mrf.mxu1 }
  0xe5   :  { %353 = vst [vmem:[#allocation4 + $0xa8] sm:$0xff] %v175_v27 }
  0xe6   :  { %v177_v28 = vpop.f32.mrf.mxu1  ;;  %v281_v29 = vpop.f32.mrf.mxu0 }
  0xe7   :  { %354 = vst [vmem:[#allocation4 + $0xd0] sm:$0xff] %v177_v28  ;;  %357 = vst [vmem:[#allocation4 + $0x60] sm:$0xff] %v281_v29  ;;  %v3140_v28 = vld [vmem:[%s3379_s2] sm:$0x3] }
  0xe8   :  { %v179_v30 = vpop.f32.mrf.mxu1  ;;  %v283_v31 = vpop.f32.mrf.mxu0  ;;  %v3145_v29 = vld [vmem:[%s3379_s2] sm:$0x3] }
  0xe9   :  { %361 = vst [vmem:[#allocation4 + $0x80] sm:$0xff] %v179_v30  ;;  %358 = vst [vmem:[#allocation4 + $0x28] sm:$0xff] %v283_v31 }
  0xea   :  { %v181_v32 = vpop.f32.mrf.mxu1  ;;  %v285_v33 = vpop.f32.mrf.mxu0 }
  0xeb   :  { %362 = vst [vmem:[#allocation4 + $0xe0] sm:$0xff] %v181_v32  ;;  %365 = vst [vmem:[#allocation4 + $0x20] sm:$0xff] %v285_v33 }
  0xec   :  { %v185_v34 = vpop.f32.mrf.mxu1  ;;  %v287_v35 = vpop.f32.mrf.mxu0 }
  0xed   :  { %369 = vst [vmem:[#allocation4 + $0x88] sm:$0xff] %v185_v34  ;;  %366 = vst [vmem:[#allocation4 + $0xf0] sm:$0xff] %v287_v35 }
  0xee   :  { %v187_v36 = vpop.f32.mrf.mxu1  ;;  %v291_v37 = vpop.f32.mrf.mxu0  ;;  %v3063_v48 = vld [vmem:[#allocation4 + $0x60] sm:$0xc]  ;;  %v3065_v49 = vld [vmem:[#allocation4 + $0x60] sm:$0xc0] }
  0xef   :  { %370 = vst [vmem:[#allocation4 + $0x58] sm:$0xff] %v187_v36  ;;  %373 = vst [vmem:[#allocation4 + $0x18] sm:$0xff] %v291_v37  ;;  %v393_v62 = vrot.slane %v3063_v48, 2 }
  0xf0   :  { %v189_v38 = vpop.f32.mrf.mxu1  ;;  %v293_v39 = vpop.f32.mrf.mxu0  ;;  %v3076_v54 = vld [vmem:[#allocation4 + $0x28] sm:$0xc]  ;;  %v3078_v55 = vld [vmem:[#allocation4 + $0x28] sm:$0xc0]  ;;  %v554_v32 = vld [vmem:[#allocation4 + $0x80] sm:$0xc] }
  0xf1   :  { %377 = vst [vmem:[#allocation4] sm:$0xff] %v189_v38  ;;  %374 = vst [vmem:[#allocation4 + $0x90] sm:$0xff] %v293_v39 }
  0xf2   :  { %v191_v40 = vpop.f32.mrf.mxu1  ;;  %v295_v42 = vpop.f32.mrf.mxu0  ;;  %v3085_v57 = vld [vmem:[#allocation4 + $0x20] sm:$0xc]  ;;  %v3087_v58 = vld [vmem:[#allocation4 + $0x20] sm:$0xc0] }
  0xf3   :  { %378 = vst [vmem:[#allocation4 + $0x8] sm:$0xff] %v191_v40  ;;  %381 = vst [vmem:[#allocation4 + $0xa0] sm:$0xff] %v295_v42 }
  0xf4   :  { %v228_v43 = vpop.f32.mrf.mxu1  ;;  %v297_v44 = vpop.f32.mrf.mxu0  ;;  %v3101_v0 = vld [vmem:[#allocation4 + $0xf0] sm:$0xc]  ;;  %v3103_v1 = vld [vmem:[#allocation4 + $0xf0] sm:$0xc0] }
  0xf5   :  { %355 = vst [vmem:[#allocation4 + $0x10] sm:$0xff] %v228_v43  ;;  %382 = vst [vmem:[#allocation4 + $0x50] sm:$0xff] %v297_v44 }
  0xf6   :  { %v230_v45 = vpop.f32.mrf.mxu1  ;;  %v3107_v5 = vld [vmem:[#allocation4 + $0x18] sm:$0xc]  ;;  %v3109_v6 = vld [vmem:[#allocation4 + $0x18] sm:$0xc0] }
  0xf7   :  { %356 = vst [vmem:[#allocation4 + $0x48] sm:$0xff] %v230_v45 }
  0xf8   :  { %v232_v47 = vpop.f32.mrf.mxu1  ;;  %v3123_v11 = vld [vmem:[#allocation4 + $0x90] sm:$0xc]  ;;  %v3125_v12 = vld [vmem:[#allocation4 + $0x90] sm:$0xc0] }
  0xf9   :  { %363 = vst [vmem:[#allocation4 + $0xf8] sm:$0xff] %v232_v47 }
  0xfa   :  { %v234_v50 = vpop.f32.mrf.mxu1  ;;  %v3149_v33 = vld [vmem:[#allocation4 + $0xa0] sm:$0xc]  ;;  %v3157_v40 = vld [vmem:[#allocation4 + $0xa0] sm:$0xc0] }
  0xfb   :  { %364 = vst [vmem:[#allocation4 + $0xb8] sm:$0xff] %v234_v50 }
  0xfc   :  { %v238_v59 = vpop.f32.mrf.mxu1  ;;  %v438_v15 = vld [vmem:[#allocation4 + $0x10] sm:$0x30]  ;;  %v385_v43 = vld [vmem:[#allocation4 + $0x10] sm:$0x3]  ;;  %v3168_v35 = vld [vmem:[#allocation4 + $0x50] sm:$0xc] }
  0xfd   :  { %371 = vst [vmem:[#allocation4 + $0x30] sm:$0xff] %v238_v59  ;;  %v442_v44 = vrot.slane %v438_v15, 2  ;;  %v813_v59 = vrot.slane %v3157_v40, 4  ;;  %v3175_v27 = vld [vmem:[#allocation4 + $0x50] sm:$0xc0] }
  0xfe   :  { %v240_v4 = vpop.f32.mrf.mxu1  ;;  %v439_v16 = vld [vmem:[#allocation4 + $0x48] sm:$0x30]  ;;  %v386_v13 = vld [vmem:[#allocation4 + $0x48] sm:$0x3]  ;;  %v555_v40 = vld [vmem:[#allocation4 + $0xe0] sm:$0xc] }
  0xff   :  { %372 = vst [vmem:[#allocation4 + $0xc8] sm:$0xff] %v240_v4  ;;  %v443_v45 = vrot.slane %v439_v16, 2  ;;  %v434_v4 = vld [vmem:[#allocation4 + $0xa8] sm:$0xc]  ;;  %v494_v16 = vld [vmem:[#allocation4 + $0xd0] sm:$0xc0] }
 0x100   :  { %v242_v22 = vpop.f32.mrf.mxu1  ;;  %v497_v30 = vld [vmem:[#allocation4 + $0xf8] sm:$0x3]  ;;  %v558_v36 = vld [vmem:[#allocation4 + $0xf8] sm:$0x30] }
 0x101   :  { %379 = vst [vmem:[#allocation4 + $0xd8] sm:$0xff] %v242_v22  ;;  %v435_v22 = vld [vmem:[#allocation4 + $0xd0] sm:$0xc]  ;;  %v501_v25 = vrot.slane %v497_v30, 2  ;;  %v562_v50 = vrot.slane %v558_v36, 2 }
 0x102   :  { %v244_v39 = vpop.f32.mrf.mxu1  ;;  %v498_v46 = vld [vmem:[#allocation4 + $0xb8] sm:$0x3]  ;;  %v559_v47 = vld [vmem:[#allocation4 + $0xb8] sm:$0x30]  ;;  %v447_v31 = vadd.f32 %v443_v45, %v435_v22  ;;  %v814_v45 = vrot.slane %v3175_v27, 4 }
 0x103   :  { %380 = vst [vmem:[#allocation4 + $0x68] sm:$0xff] %v244_v39  ;;  %v493_v39 = vld [vmem:[#allocation4 + $0xa8] sm:$0xc0]  ;;  %v502_v41 = vrot.slane %v498_v46, 2  ;;  %v563_v26 = vrot.slane %v559_v47, 2  ;;  %v397_v47 = vadd.f32 %v393_v62, %v385_v43  ;;  %v566_v63 = vadd.f32 %v562_v50, %v554_v32 }
 0x104   :  { %v618_v24 = vld [vmem:[#allocation4 + $0x30] sm:$0x3]  ;;  %v334_v42 = vpop.f32.mrf.mxu1  ;;  %v679_v34 = vld [vmem:[#allocation4 + $0x30] sm:$0x30]  ;;  %v614_v46 = vld [vmem:[#allocation4 + $0x80] sm:$0xc0]  ;;  %v505_v14 = vadd.f32 %v501_v25, %v493_v39 }
 0x105   :  { %359 = vst [vmem:[#allocation4 + $0x40] sm:$0xff] %v334_v42  ;;  %v446_v42 = vadd.f32 %v442_v44, %v434_v4  ;;  %v622_v30 = vrot.slane %v618_v24, 2  ;;  %v683_v17 = vrot.slane %v679_v34, 2  ;;  %v795_v24 = vld [vmem:[#allocation4] sm:$0xc]  ;;  %v506_v22 = vadd.f32 %v502_v41, %v494_v16 }
 0x106   :  { %v619_v15 = vld [vmem:[#allocation4 + $0xc8] sm:$0x3]  ;;  %v680_v38 = vld [vmem:[#allocation4 + $0xc8] sm:$0x30]  ;;  %v336_v37 = vpop.f32.mrf.mxu1  ;;  %v567_v48 = vadd.f32 %v563_v26, %v555_v40  ;;  %v615_v43 = vld [vmem:[#allocation4 + $0xe0] sm:$0xc0] }
 0x107   :  { %360 = vst [vmem:[#allocation4 + $0x78] sm:$0xff] %v336_v37  ;;  %v623_v10 = vrot.slane %v619_v15, 2  ;;  %v684_v2 = vrot.slane %v680_v38, 2  ;;  %v3393_v37 = vrot.slane %v3076_v54, 2  ;;  %v675_v15 = vld [vmem:[#allocation4 + $0x88] sm:$0xc]  ;;  %v626_v18 = vadd.f32 %v622_v30, %v614_v46 }
 0x108   :  { %v738_v36 = vld [vmem:[#allocation4 + $0xd8] sm:$0x3]  ;;  %v799_v9 = vld [vmem:[#allocation4 + $0xd8] sm:$0x30]  ;;  %v338_v3 = vpop.f32.mrf.mxu1  ;;  %v734_v39 = vld [vmem:[#allocation4 + $0x88] sm:$0xc0]  ;;  %v687_v26 = vadd.f32 %v683_v17, %v675_v15 }
 0x109   :  { %v803_v44 = vrot.slane %v799_v9, 2  ;;  %367 = vst [vmem:[#allocation4 + $0xb0] sm:$0xff] %v338_v3  ;;  %v398_v4 = vadd.f32 %v3393_v37, %v386_v13  ;;  %v742_v62 = vrot.slane %v738_v36, 2  ;;  %v3394_v32 = vrot.slane %v3065_v49, 4  ;;  %v676_v38 = vld [vmem:[#allocation4 + $0x58] sm:$0xc] }
 0x10a   :  { %v800_v25 = vld [vmem:[#allocation4 + $0x68] sm:$0x30]  ;;  %v340_v34 = vpop.f32.mrf.mxu1  ;;  %v3395_v3 = vrot.slane %v3078_v55, 4  ;;  %v3396_v54 = vrot.slane %v3085_v57, 4  ;;  %v627_v41 = vadd.f32 %v623_v10, %v615_v43  ;;  %v796_v40 = vld [vmem:[#allocation4 + $0x8] sm:$0xc] }
 0x10b   :  { %v807_v23 = vadd.f32 %v803_v44, %v795_v24  ;;  %v456_v9 = vadd.f32 %v3394_v32, %v446_v42  ;;  %368 = vst [vmem:[#allocation4 + $0x38] sm:$0xff] %v340_v34  ;;  %v804_v50 = vrot.slane %v800_v25, 2  ;;  %v3397_v30 = vrot.slane %v3087_v58, 4  ;;  %v739_v49 = vld [vmem:[#allocation4 + $0x68] sm:$0x3] }
 0x10c   :  { %v457_v27 = vadd.f32 %v3395_v3, %v447_v31  ;;  %v515_v13 = vadd.f32 %v3396_v54, %v505_v14  ;;  %v399_v16 = vld [vmem:[#allocation4 + $0x40] sm:$0x30]  ;;  %v344_v36 = vpop.f32.mrf.mxu1  ;;  %v688_v44 = vadd.f32 %v684_v2, %v676_v38  ;;  %v3398_v55 = vrot.slane %v3101_v0, 4 }
 0x10d   :  { %v576_v46 = vadd.f32 %v3397_v30, %v566_v63  ;;  %v817_v42 = vadd.f32 %v813_v59, %v807_v23  ;;  %v403_v24 = vrot.slane %v399_v16, 4  ;;  %375 = vst [vmem:[#allocation4 + $0x70] sm:$0xff] %v344_v36  ;;  %v3399_v57 = vrot.slane %v3103_v1, 4 }
 0x10e   :  { %v516_v31 = vadd.f32 %v3398_v55, %v506_v22  ;;  %v746_v10 = vadd.f32 %v742_v62, %v734_v39  ;;  %v808_v17 = vadd.f32 %v804_v50, %v796_v40  ;;  %v400_v37 = vld [vmem:[#allocation4 + $0x78] sm:$0x30]  ;;  %v346_v25 = vpop.f32.mrf.mxu1  ;;  %v3400_v34 = vrot.slane %v3107_v5, 4  ;;  %v735_v40 = vld [vmem:[#allocation4 + $0x58] sm:$0xc0] }
 0x10f   :  { %v3203_v14 = vadd.f32 %v3399_v57, %v567_v48  ;;  %v3401_v63 = vrot.slane %v3072_v52, %v3067_v51  ;;  %v407_v2 = vadd.f32 %v403_v24, %v397_v47  ;;  %v404_v59 = vrot.slane %v400_v37, 4  ;;  %376 = vst [vmem:[#allocation4 + $0xc0] sm:$0xff] %v346_v25 }
 0x110   :  { %v636_v58 = vadd.f32 %v3400_v34, %v626_v18  ;;  %v3402_v0 = vrot.slane %v3109_v6, 4  ;;  %v3403_v1 = vrot.slane %v3123_v11, 4  ;;  %v743_v62 = vrot.slane %v739_v49, 2  ;;  %v458_v15 = vld [vmem:[#allocation4 + $0xb0] sm:$0x3]  ;;  %v348_v18 = vpop.f32.mrf.mxu1 }
 0x111   :  { %v831_v23 = vadd.f32 %v3401_v63, %v817_v42  ;;  %v818_v43 = vadd.f32 %v814_v45, %v808_v17  ;;  %v517_v5 = vld [vmem:[#allocation4 + $0xb0] sm:$0x30]  ;;  %v3404_v39 = vrot.slane %v3125_v12, 4  ;;  %v3405_v47 = vrot.slane %v3083_v56, %v3067_v51  ;;  %383 = vst [vmem:[#allocation4 + $0xe8] sm:$0xff] %v348_v18 }
 0x112   :  { %v3212_v22 = vadd.f32 %v3402_v0, %v687_v26  ;;  %v3216_v48 = vadd.f32 %v3403_v1, %v627_v41  ;;  %v408_v6 = vadd.f32 %v404_v59, %v398_v4  ;;  %v462_v38 = vrot.slane %v458_v15, 6  ;;  %v459_v16 = vld [vmem:[#allocation4 + $0x38] sm:$0x3]  ;;  %v518_v12 = vld [vmem:[#allocation4 + $0x38] sm:$0x30]  ;;  %v350_v36 = vpop.f32.mrf.mxu1 }
 0x113   :  { %v3220_v32 = vadd.f32 %v3404_v39, %v688_v44  ;;  %v421_v3 = vadd.f32 %v3405_v47, %v407_v2  ;;  %v3406_v11 = vrot.slane %v3149_v33, 4  ;;  %v833_v26 = vmax.f32 %v831_v23, 0.0  ;;  %384 = vst [vmem:[#allocation4 + $0x98] sm:$0xff] %v350_v36 }
 0x114   :  { %v3407_v45 = vrot.slane %v3072_v52, %v3074_v53  ;;  %v521_v50 = vrot.slane %v517_v5, 6  ;;  %v3408_v44 = vrot.slane %v3083_v56, %v3074_v53  ;;  %v466_v49 = vadd.f32 %v462_v38, %v456_v9  ;;  %v638_v52 = vld [vmem:[#allocation4 + $0x70] sm:$0x30] }
 0x115   :  { %v756_v54 = vadd.f32 %v3406_v11, %v746_v10  ;;  %v423_v30 = vmax.f32 %v421_v3, 0.0  ;;  %v463_v42 = vrot.slane %v459_v16, 6  ;;  %v747_v33 = vadd.f32 %v743_v62, %v735_v40  ;;  %v578_v10 = vld [vmem:[#allocation4 + $0x70] sm:$0x3] }
 0x116   :  { %v832_v41 = vadd.f32 %v3407_v45, %v818_v43  ;;  %v422_v4 = vadd.f32 %v3408_v44, %v408_v6  ;;  %v525_v55 = vadd.f32 %v521_v50, %v515_v13  ;;  %v522_v57 = vrot.slane %v518_v12, 6  ;;  %v579_v0 = vld [vmem:[#allocation4 + $0xc0] sm:$0x3]  ;;  %v639_v1 = vld [vmem:[#allocation4 + $0xc0] sm:$0x30] }
 0x117   :  { %v3409_v37 = vrot.slane %v3092_v60, %v3067_v51  ;;  %v467_v34 = vadd.f32 %v463_v42, %v457_v27  ;;  %v582_v63 = vrot.slane %v578_v10, 6  ;;  %v3410_v56 = vrot.slane %v3097_v61, %v3067_v51 }
 0x118   :  { %v834_v24 = vmax.f32 %v832_v41, 0.0  ;;  %v424_v17 = vmax.f32 %v422_v4, 0.0  ;;  %v526_v2 = vadd.f32 %v522_v57, %v516_v31  ;;  %v642_v59 = vrot.slane %v638_v52, 6  ;;  %v699_v6 = vld [vmem:[#allocation4 + $0xe8] sm:$0x3] }
 0x119   :  { %v480_v25 = vadd.f32 %v3409_v37, %v466_v49  ;;  %v539_v9 = vadd.f32 %v3410_v56, %v525_v55  ;;  %v3411_v43 = vrot.slane %v3092_v60, %v3074_v53  ;;  %v586_v5 = vadd.f32 %v582_v63, %v576_v46  ;;  %v758_v38 = vld [vmem:[#allocation4 + $0xe8] sm:$0x30] }
 0x11a   :  { %v2750_v23 = vpack.c.bf16 %v834_v24, %v833_v26  ;;  %v2743_v13 = vpack.c.bf16 %v424_v17, %v423_v30  ;;  %v3412_v27 = vrot.slane %v3097_v61, %v3074_v53  ;;  %v646_v3 = vadd.f32 %v642_v59, %v636_v58  ;;  %v700_v12 = vld [vmem:[#allocation4 + $0x98] sm:$0x3]  ;;  %v759_v4 = vld [vmem:[#allocation4 + $0x98] sm:$0x30] }
 0x11b   :  { %v482_v62 = vmax.f32 %v480_v25, 0.0  ;;  %v481_v15 = vadd.f32 %v3411_v43, %v467_v34  ;;  %v541_v39 = vmax.f32 %v539_v9, 0.0  ;;  %v3413_v11 = vrot.slane %v3114_v7, %v3067_v51 }
 0x11c   :  { %v842_v18 = vrot.slane %v2750_v23, 6  ;;  %v540_v47 = vadd.f32 %v3412_v27, %v526_v2  ;;  %433 = vst [vmem:[#allocation2] sm:$0x11] %v2743_v13  ;;  %v583_v45 = vrot.slane %v579_v0, 6  ;;  %v643_v41 = vrot.slane %v639_v1, 6  ;;  %v897_v27 = vld [vmem:[#allocation5 + $0x190] sm:$0xff] }
 0x11d   :  { %v483_v31 = vmax.f32 %v481_v15, 0.0  ;;  %v600_v26 = vadd.f32 %v3413_v11, %v586_v5  ;;  %v3414_v46 = vrot.slane %v3119_v8, %v3067_v51  ;;  %v703_v16 = vrot.slane %v699_v6, 6 }
 0x11e   :  { %844 = vst [vmem:[#allocation2 + $0x8] sm:$0x88] %v842_v18  ;;  %v542_v60 = vmax.f32 %v540_v47, 0.0  ;;  %v762_v61 = vrot.slane %v758_v38, 6  ;;  %v3415_v58 = vrot.slane %v3168_v35, 4  ;;  %v587_v30 = vadd.f32 %v583_v45, %v3203_v14  ;;  %v898_v47 = vld [vmem:[#allocation5 + $0x198] sm:$0xff] }
 0x11f   :  { %v660_v50 = vadd.f32 %v3414_v46, %v646_v3  ;;  %v2744_v40 = vpack.c.bf16 %v483_v31, %v482_v62  ;;  %v647_v44 = vadd.f32 %v643_v41, %v3216_v48  ;;  %v602_v42 = vmax.f32 %v600_v26, 0.0  ;;  %v902_v3 = vld [vmem:[#allocation5 + $0x1b8] sm:$0xff]  ;;  %v889_v38 = vld [vmem:[#allocation5 + $0x150] sm:$0xff]  ;;  %v3423_v46 = vld [vmem:[#allocation11_spill] sm:$0xff] }
 0x120   :  { %v757_v36 = vadd.f32 %v3415_v58, %v747_v33  ;;  %v2745_v49 = vpack.c.bf16 %v542_v60, %v541_v39  ;;  %v707_v24 = vadd.f32 %v703_v16, %v3212_v22  ;;  %v766_v55 = vadd.f32 %v762_v61, %v756_v54  ;;  %v893_v26 = vld [vmem:[#allocation5 + $0x170] sm:$0xff]  ;;  %v890_v45 = vld [vmem:[#allocation5 + $0x158] sm:$0xff] }
 0x121   :  { %492 = vst [vmem:[#allocation2] sm:$0x22] %v2744_v40  ;;  %v3416_v57 = vrot.slane %v3114_v7, %v3074_v53  ;;  %v3417_v35 = vrot.slane %v3119_v8, %v3074_v53  ;;  %v704_v52 = vrot.slane %v700_v12, 6  ;;  %v763_v17 = vrot.slane %v759_v4, 6  ;;  %v894_v41 = vld [vmem:[#allocation5 + $0x178] sm:$0xff]  ;;  %v885_v40 = vld [vmem:[#allocation5 + $0x130] sm:$0xff] }
 0x122   :  { %v2552_v14 = vrot.slane %v2745_v49, 9  ;;  %v662_v37 = vmax.f32 %v660_v50, 0.0  ;;  %v3418_v48 = vrot.slane %v3140_v28, %v3067_v51  ;;  %v3419_v22 = vrot.slane %v3145_v29, %v3067_v51  ;;  %v873_v49 = vld [vmem:[#allocation5 + $0xd0] sm:$0xff] }
 0x123   :  { %v601_v10 = vadd.f32 %v3416_v57, %v587_v30  ;;  %v661_v33 = vadd.f32 %v3417_v35, %v647_v44  ;;  %v708_v7 = vadd.f32 %v704_v52, %v3220_v32  ;;  %v767_v23 = vadd.f32 %v763_v17, %v757_v36  ;;  %v881_v36 = vld [vmem:[#allocation5 + $0x110] sm:$0xff]  ;;  %v882_v30 = vld [vmem:[#allocation5 + $0x118] sm:$0xff] }
 0x124   :  { %v721_v25 = vadd.f32 %v3418_v48, %v707_v24  ;;  %v780_v54 = vadd.f32 %v3419_v22, %v766_v55  ;;  %553 = vst [vmem:[#allocation2] sm:$0x44] %v2552_v14  ;;  %v3420_v9 = vrot.slane %v3140_v28, %v3074_v53  ;;  %v3421_v59 = vrot.slane %v3145_v29, %v3074_v53  ;;  %v901_v28 = vld [vmem:[#allocation5 + $0x1b0] sm:$0xff]  ;;  %v886_v44 = vld [vmem:[#allocation5 + $0x138] sm:$0xff] }
 0x125   :  { %v603_v34 = vmax.f32 %v601_v10, 0.0  ;;  %v663_v63 = vmax.f32 %v661_v33, 0.0  ;;  %v2615_v31 = vcombine.high %v897_v27, %v901_v28  ;;  %v2617_v11 = vcombine.high %v898_v47, %v902_v3  ;;  %v874_v24 = vld [vmem:[#allocation5 + $0xd8] sm:$0xff]  ;;  %v865_v52 = vld [vmem:[#allocation5 + $0x90] sm:$0xff] }
 0x126   :  { %v722_v2 = vadd.f32 %v3420_v9, %v708_v7  ;;  %v781_v0 = vadd.f32 %v3421_v59, %v767_v23  ;;  %v723_v1 = vmax.f32 %v721_v25, 0.0  ;;  %v782_v13 = vmax.f32 %v780_v54, 0.0  ;;  %v878_v55 = vld [vmem:[#allocation5 + $0xf8] sm:$0xff]  ;;  %v869_v17 = vld [vmem:[#allocation5 + $0xb0] sm:$0xff] }
 0x127   :  { %v2746_v8 = vpack.c.bf16 %v603_v34, %v602_v42  ;;  %v2747_v56 = vpack.c.bf16 %v663_v63, %v662_v37  ;;  %v3422_v60 = vcombine.low %v3047_v19, %v3049_v20  ;;  %v3424_v50 = vcombine.low %v3051_v21, %v3423_v46  ;;  %v877_v42 = vld [vmem:[#allocation5 + $0xf0] sm:$0xff]  ;;  %v866_v14 = vld [vmem:[#allocation5 + $0x98] sm:$0xff] }
 0x128   :  { %v724_v15 = vmax.f32 %v722_v2, 0.0  ;;  %v783_v5 = vmax.f32 %v781_v0, 0.0  ;;  %v2614_v16 = vcombine.low %v897_v27, %v901_v28  ;;  %v2616_v61 = vcombine.low %v898_v47, %v902_v3  ;;  %v870_v37 = vld [vmem:[#allocation5 + $0xb8] sm:$0xff]  ;;  %v857_v34 = vld [vmem:[#allocation5 + $0x50] sm:$0xff] }
 0x129   :  { %v611_v62 = vrot.slane %v2746_v8, 6  ;;  %v2555_v43 = vrot.slane %v2747_v56, 11  ;;  %v2607_v12 = vcombine.high %v889_v38, %v893_v26  ;;  %v2609_v58 = vcombine.high %v890_v45, %v894_v41  ;;  %v861_v63 = vld [vmem:[#allocation5 + $0x70] sm:$0xff]  ;;  %v858_v7 = vld [vmem:[#allocation5 + $0x58] sm:$0xff] }
 0x12a   :  { %v2748_v32 = vpack.c.bf16 %v724_v15, %v723_v1  ;;  %v2749_v18 = vpack.c.bf16 %v783_v5, %v782_v13  ;;  %v2606_v19 = vcombine.low %v889_v38, %v893_v26  ;;  %v2608_v20 = vcombine.low %v890_v45, %v894_v41  ;;  %v862_v23 = vld [vmem:[#allocation5 + $0x78] sm:$0xff]  ;;  %v849_v59 = vld [vmem:[#allocation5 + $0x10] sm:$0xff] }
 0x12b   :  { %613 = vst [vmem:[#allocation2] sm:$0x88] %v611_v62  ;;  %674 = vst [vmem:[#allocation2 + $0x8] sm:$0x11] %v2555_v43  ;;  %v2599_v21 = vcombine.high %v881_v36, %v885_v40  ;;  %v2601_v4 = vcombine.high %v882_v30, %v886_v44  ;;  %v2598_v57 = vcombine.low %v881_v36, %v885_v40  ;;  %v853_v0 = vld [vmem:[#allocation5 + $0x30] sm:$0xff]  ;;  %v850_v1 = vld [vmem:[#allocation5 + $0x18] sm:$0xff] }
 0x12c   :  { %v2558_v39 = vrot.slane %v2749_v18, 9  ;;  %733 = vst [vmem:[#allocation2 + $0x8] sm:$0x22] %v2748_v32  ;;  %v2600_v10 = vcombine.low %v882_v30, %v886_v44  ;;  %v2591_v35 = vcombine.high %v873_v49, %v877_v42  ;;  %v2593_v33 = vcombine.high %v874_v24, %v878_v55  ;;  %v854_v13 = vld [vmem:[#allocation5 + $0x38] sm:$0xff]  ;;  %v969_v32 = vld [vmem:[#allocation5 + $0x3d0] sm:$0xff] }
 0x12d   :  { %v2590_v48 = vcombine.low %v873_v49, %v877_v42  ;;  %v2592_v25 = vcombine.low %v874_v24, %v878_v55  ;;  %v2583_v22 = vcombine.high %v865_v52, %v869_v17  ;;  %v2585_v54 = vcombine.high %v866_v14, %v870_v37  ;;  %v973_v18 = vld [vmem:[#allocation5 + $0x3f0] sm:$0xff]  ;;  %v974_v27 = vld [vmem:[#allocation5 + $0x3f8] sm:$0xff] }
 0x12e   :  { %794 = vst [vmem:[#allocation2 + $0x8] sm:$0x44] %v2558_v39  ;;  %v2582_v8 = vcombine.low %v865_v52, %v869_v17  ;;  %v2584_v56 = vcombine.low %v866_v14, %v870_v37  ;;  %v2575_v9 = vcombine.high %v857_v34, %v861_v63  ;;  %v2577_v2 = vcombine.high %v858_v7, %v862_v23  ;;  %v970_v39 = vld [vmem:[#allocation5 + $0x3d8] sm:$0xff]  ;;  %v961_v38 = vld [vmem:[#allocation5 + $0x390] sm:$0xff] }
 0x12f   :  { %v2574_v62 = vcombine.low %v857_v34, %v861_v63  ;;  %v2576_v43 = vcombine.low %v858_v7, %v862_v23  ;;  %v2567_v15 = vcombine.high %v849_v59, %v853_v0  ;;  %v2569_v5 = vcombine.high %v850_v1, %v854_v13  ;;  %v966_v26 = vld [vmem:[#allocation5 + $0x3b8] sm:$0xff]  ;;  %v945_v44 = vld [vmem:[#allocation5 + $0x310] sm:$0xff] }
 0x130   :  { %v2566_v28 = vcombine.low %v849_v59, %v853_v0  ;;  %v2568_v47 = vcombine.low %v850_v1, %v854_v13  ;;  %v2687_v3 = vcombine.high %v969_v32, %v973_v18  ;;  %v2686_v45 = vcombine.low %v969_v32, %v973_v18  ;;  %v937_v55 = vld [vmem:[#allocation5 + $0x2d0] sm:$0xff] }
 0x131   :  { %v2688_v41 = vcombine.low %v970_v39, %v974_v27  ;;  %v929_v37 = vld [vmem:[#allocation5 + $0x290] sm:$0xff] }
 0x132   :  { %v921_v23 = vld [vmem:[#allocation5 + $0x250] sm:$0xff] }
 0x133   :  { %v913_v13 = vld [vmem:[#allocation5 + $0x210] sm:$0xff] }
 0x135   :  { %v3275_v6 = vld [vmem:[#allocation2] ss:$8 sps:$4 sm:$0xff]   ;;  %v2815_v29 = vld [vmem:[#allocation2 + $0x4] ss:$8 sps:$4 sm:$0xff]  }
 0x136   :  { %1657 = vmatprep.mubr.bf16.mxu0 %v2815_v29  ;;  %1700 = vmatprep.mubr.bf16.mxu1 %v2815_v29 }
 0x137   :  { %1658 = vmatmul.mubr.bf16.vlgmr.msra.gmra.mxu0 %v3275_v6  ;;  %1701 = vmatmul.mubr.bf16.vlgmr.msra.gmra.mxu1 %v3275_v6 }
 0x138   :  { %1712 = vmatpush1.bf16.msra.mxu0 %v3422_v60  ;;  %1755 = vmatpush1.bf16.msra.mxu1 %v3424_v50  ;;  %v953_v50 = vld [vmem:[#allocation5 + $0x350] sm:$0xff] }
 0x139   :  { %1743 = vmatprep.mubr.bf16.mxu0 %v2815_v29  ;;  %1786 = vmatprep.mubr.bf16.mxu1 %v2815_v29  ;;  %v2689_v29 = vcombine.high %v970_v39, %v974_v27 }
 0x13a   :  { %1713 = vmatprep.subr.bf16.mxu0 %v2615_v31  ;;  %1756 = vmatprep.subr.bf16.mxu1 %v2617_v11  ;;  %v965_v31 = vld [vmem:[#allocation5 + $0x3b0] sm:$0xff]  ;;  %v962_v11 = vld [vmem:[#allocation5 + $0x398] sm:$0xff] }
 0x13b   :  { %v2679_v60 = vcombine.high %v961_v38, %v965_v31  ;;  %v2681_v46 = vcombine.high %v962_v11, %v966_v26  ;;  %v2680_v36 = vcombine.low %v962_v11, %v966_v26  ;;  %v2822_v11 = vld [vmem:[#allocation7 + $0x50] ss:$8 sps:$4 sm:$0xff]   ;;  %v2827_v26 = vld [vmem:[#allocation7 + $0x44] ss:$8 sps:$4 sm:$0xff]  }
 0x13c   :  { %1714 = vmatpush1.bf16.msra.mxu0 %v2614_v16  ;;  %1757 = vmatpush1.bf16.msra.mxu1 %v2616_v61  ;;  %v957_v16 = vld [vmem:[#allocation5 + $0x370] sm:$0xff]  ;;  %v954_v61 = vld [vmem:[#allocation5 + $0x358] sm:$0xff] }
 0x13d   :  { %1715 = vmatprep.subr.bf16.mxu0 %v2607_v12  ;;  %1758 = vmatprep.subr.bf16.mxu1 %v2609_v58  ;;  %v958_v12 = vld [vmem:[#allocation5 + $0x378] sm:$0xff]  ;;  %v2678_v58 = vcombine.low %v961_v38, %v965_v31  ;;  %v2671_v40 = vcombine.high %v953_v50, %v957_v16  ;;  %v2819_v38 = vld [vmem:[#allocation7 + $0x60] ss:$8 sps:$4 sm:$0xff]  }
 0x13e   :  { %v2673_v30 = vcombine.high %v954_v61, %v958_v12  ;;  %v2672_v49 = vcombine.low %v954_v61, %v958_v12  ;;  %v2824_v31 = vld [vmem:[#allocation7 + $0x54] ss:$8 sps:$4 sm:$0xff]   ;;  %v2839_v61 = vld [vmem:[#allocation7 + $0x4] ss:$8 sps:$4 sm:$0xff]   ;;  %v2837_v12 = vld [vmem:[#allocation7] ss:$8 sps:$4 sm:$0xff]  }
 0x140   :  { %1716 = vmatpush1.bf16.msra.mxu0 %v2606_v19  ;;  %1759 = vmatpush1.bf16.msra.mxu1 %v2608_v20  ;;  %v949_v19 = vld [vmem:[#allocation5 + $0x330] sm:$0xff]  ;;  %v946_v20 = vld [vmem:[#allocation5 + $0x318] sm:$0xff] }
 0x141   :  { %1717 = vmatprep.subr.bf16.mxu0 %v2599_v21  ;;  %1760 = vmatprep.subr.bf16.mxu1 %v2601_v4  ;;  %v950_v21 = vld [vmem:[#allocation5 + $0x338] sm:$0xff]  ;;  %v2670_v4 = vcombine.low %v953_v50, %v957_v16  ;;  %v2663_v42 = vcombine.high %v945_v44, %v949_v19 }
 0x142   :  { %v2665_v24 = vcombine.high %v946_v20, %v950_v21  ;;  %v2664_v52 = vcombine.low %v946_v20, %v950_v21  ;;  %v2836_v50 = vld [vmem:[#allocation7 + $0x14] ss:$8 sps:$4 sm:$0xff]   ;;  %v2834_v16 = vld [vmem:[#allocation7 + $0x10] ss:$8 sps:$4 sm:$0xff]   ;;  %v2849_v20 = vld [vmem:[#allocation7 + $0xc0] ss:$8 sps:$4 sm:$0xff]  }
 0x143   :  { %v2851_v21 = vld [vmem:[#allocation7 + $0xc4] ss:$8 sps:$4 sm:$0xff]  }
 0x144   :  { %1718 = vmatpush1.bf16.msra.mxu0 %v2598_v57  ;;  %1761 = vmatpush1.bf16.msra.mxu1 %v2600_v10  ;;  %v941_v57 = vld [vmem:[#allocation5 + $0x2f0] sm:$0xff]  ;;  %v938_v10 = vld [vmem:[#allocation5 + $0x2d8] sm:$0xff] }
 0x145   :  { %1719 = vmatprep.subr.bf16.mxu0 %v2591_v35  ;;  %1762 = vmatprep.subr.bf16.mxu1 %v2593_v33  ;;  %v942_v35 = vld [vmem:[#allocation5 + $0x2f8] sm:$0xff]  ;;  %v2662_v33 = vcombine.low %v945_v44, %v949_v19  ;;  %v2655_v17 = vcombine.high %v937_v55, %v941_v57 }
 0x146   :  { %v2657_v14 = vcombine.high %v938_v10, %v942_v35  ;;  %v2656_v34 = vcombine.low %v938_v10, %v942_v35  ;;  %v2848_v44 = vld [vmem:[#allocation7 + $0xd4] ss:$8 sps:$4 sm:$0xff]   ;;  %v2846_v19 = vld [vmem:[#allocation7 + $0xd0] ss:$8 sps:$4 sm:$0xff]   ;;  %v2863_v10 = vld [vmem:[#allocation7 + $0x84] ss:$8 sps:$4 sm:$0xff]  }
 0x147   :  { %v2861_v35 = vld [vmem:[#allocation7 + $0x80] ss:$8 sps:$4 sm:$0xff]  }
 0x148   :  { %1720 = vmatpush1.bf16.msra.mxu0 %v2590_v48  ;;  %1763 = vmatpush1.bf16.msra.mxu1 %v2592_v25  ;;  %v933_v48 = vld [vmem:[#allocation5 + $0x2b0] sm:$0xff]  ;;  %v930_v25 = vld [vmem:[#allocation5 + $0x298] sm:$0xff] }
 0x149   :  { %1721 = vmatprep.subr.bf16.mxu0 %v2583_v22  ;;  %1764 = vmatprep.subr.bf16.mxu1 %v2585_v54  ;;  %v934_v22 = vld [vmem:[#allocation5 + $0x2b8] sm:$0xff]  ;;  %v2654_v54 = vcombine.low %v937_v55, %v941_v57  ;;  %v2647_v63 = vcombine.high %v929_v37, %v933_v48 }
 0x14a   :  { %v2649_v7 = vcombine.high %v930_v25, %v934_v22  ;;  %v2648_v59 = vcombine.low %v930_v25, %v934_v22  ;;  %v2860_v55 = vld [vmem:[#allocation7 + $0x94] ss:$8 sps:$4 sm:$0xff]   ;;  %v2858_v57 = vld [vmem:[#allocation7 + $0x90] ss:$8 sps:$4 sm:$0xff]  }
 0x14c   :  { %1722 = vmatpush1.bf16.msra.mxu0 %v2582_v8  ;;  %1765 = vmatpush1.bf16.msra.mxu1 %v2584_v56  ;;  %v925_v8 = vld [vmem:[#allocation5 + $0x270] sm:$0xff]  ;;  %v922_v56 = vld [vmem:[#allocation5 + $0x258] sm:$0xff] }
 0x14d   :  { %1723 = vmatprep.subr.bf16.mxu0 %v2575_v9  ;;  %1766 = vmatprep.subr.bf16.mxu1 %v2577_v2  ;;  %v926_v9 = vld [vmem:[#allocation5 + $0x278] sm:$0xff]  ;;  %v2646_v2 = vcombine.low %v929_v37, %v933_v48  ;;  %v2639_v0 = vcombine.high %v921_v23, %v925_v8 }
 0x14e   :  { %v2641_v1 = vcombine.high %v922_v56, %v926_v9  ;;  %v2640_v32 = vcombine.low %v922_v56, %v926_v9 }
 0x150   :  { %1724 = vmatpush1.bf16.msra.mxu0 %v2574_v62  ;;  %1767 = vmatpush1.bf16.msra.mxu1 %v2576_v43  ;;  %v917_v62 = vld [vmem:[#allocation5 + $0x230] sm:$0xff]  ;;  %v914_v43 = vld [vmem:[#allocation5 + $0x218] sm:$0xff] }
 0x151   :  { %1725 = vmatprep.subr.bf16.mxu0 %v2567_v15  ;;  %1768 = vmatprep.subr.bf16.mxu1 %v2569_v5  ;;  %v918_v15 = vld [vmem:[#allocation5 + $0x238] sm:$0xff]  ;;  %v2638_v5 = vcombine.low %v921_v23, %v925_v8  ;;  %v2631_v18 = vcombine.high %v913_v13, %v917_v62  ;;  %v2630_v27 = vcombine.low %v913_v13, %v917_v62  ;;  %v3290_v13 = vld [vmem:[%s3381_s4] sm:$0x3] }
 0x152   :  { %v2633_v39 = vcombine.high %v914_v43, %v918_v15  ;;  %v3295_v62 = vld [vmem:[%s3381_s4] sm:$0x3] }
 0x154   :  { %1726 = vmatpush1.bf16.msra.mxu0 %v2566_v28  ;;  %1769 = vmatpush1.bf16.msra.mxu1 %v2568_v47  ;;  %v2632_v28 = vcombine.low %v914_v43, %v918_v15  ;;  %v2816_v47 = vld [vmem:[#allocation7 + $0x70] ss:$8 sps:$4 sm:$0xff]   ;;  %v3300_v43 = vld [vmem:[%s3381_s4] sm:$0x3] }
 0x155   :  { %1727 = vmatprep.subr.bf16.mxu0 %v2687_v3  ;;  %1770 = vmatprep.subr.bf16.mxu1 %v2689_v29  ;;  %v2818_v3 = vld [vmem:[#allocation7 + $0x74] ss:$8 sps:$4 sm:$0xff]   ;;  %v2821_v29 = vld [vmem:[#allocation7 + $0x64] ss:$8 sps:$4 sm:$0xff]  }
 0x158   :  { %1728 = vmatpush2.bf16.msra.mxu0 %v2686_v45  ;;  %1771 = vmatpush2.bf16.msra.mxu1 %v2688_v41  ;;  %v2825_v45 = vld [vmem:[#allocation7 + $0x40] ss:$8 sps:$4 sm:$0xff]   ;;  %v2830_v41 = vld [vmem:[#allocation7 + $0x34] ss:$8 sps:$4 sm:$0xff]  }
 0x159   :  { %1729 = vmatprep.subr.bf16.mxu0 %v2679_v60  ;;  %1772 = vmatprep.subr.bf16.mxu1 %v2681_v46  ;;  %v2828_v60 = vld [vmem:[#allocation7 + $0x30] ss:$8 sps:$4 sm:$0xff]   ;;  %v2831_v46 = vld [vmem:[#allocation7 + $0x20] ss:$8 sps:$4 sm:$0xff]  }
 0x15c   :  { %1730 = vmatpush2.bf16.msra.mxu0 %v2678_v58  ;;  %1773 = vmatpush2.bf16.msra.mxu1 %v2680_v36  ;;  %v2842_v58 = vld [vmem:[#allocation7 + $0xf4] ss:$8 sps:$4 sm:$0xff]   ;;  %v2840_v36 = vld [vmem:[#allocation7 + $0xf0] ss:$8 sps:$4 sm:$0xff]  }
 0x15d   :  { %1731 = vmatprep.subr.bf16.mxu0 %v2671_v40  ;;  %1774 = vmatprep.subr.bf16.mxu1 %v2673_v30  ;;  %v2845_v40 = vld [vmem:[#allocation7 + $0xe4] ss:$8 sps:$4 sm:$0xff]   ;;  %v2843_v30 = vld [vmem:[#allocation7 + $0xe0] ss:$8 sps:$4 sm:$0xff]  }
 0x160   :  { %1732 = vmatpush2.bf16.msra.mxu0 %v2670_v4  ;;  %1775 = vmatpush2.bf16.msra.mxu1 %v2672_v49  ;;  %v2854_v4 = vld [vmem:[#allocation7 + $0xb4] ss:$8 sps:$4 sm:$0xff]   ;;  %v2852_v49 = vld [vmem:[#allocation7 + $0xb0] ss:$8 sps:$4 sm:$0xff]  }
 0x161   :  { %1733 = vmatprep.subr.bf16.mxu0 %v2663_v42  ;;  %1776 = vmatprep.subr.bf16.mxu1 %v2665_v24  ;;  %v2857_v42 = vld [vmem:[#allocation7 + $0xa4] ss:$8 sps:$4 sm:$0xff]   ;;  %v2855_v24 = vld [vmem:[#allocation7 + $0xa0] ss:$8 sps:$4 sm:$0xff]  }
 0x164   :  { %1734 = vmatpush2.bf16.msra.mxu0 %v2662_v33  ;;  %1777 = vmatpush2.bf16.msra.mxu1 %v2664_v52 }
 0x165   :  { %1735 = vmatprep.subr.bf16.mxu0 %v2655_v17  ;;  %1778 = vmatprep.subr.bf16.mxu1 %v2657_v14 }
 0x168   :  { %1736 = vmatpush2.bf16.msra.mxu0 %v2654_v54  ;;  %1779 = vmatpush2.bf16.msra.mxu1 %v2656_v34 }
 0x169   :  { %1737 = vmatprep.subr.bf16.mxu0 %v2647_v63  ;;  %1780 = vmatprep.subr.bf16.mxu1 %v2649_v7 }
 0x16c   :  { %1738 = vmatpush2.bf16.msra.mxu0 %v2646_v2  ;;  %1781 = vmatpush2.bf16.msra.mxu1 %v2648_v59 }
 0x16d   :  { %1739 = vmatprep.subr.bf16.mxu0 %v2639_v0  ;;  %1782 = vmatprep.subr.bf16.mxu1 %v2641_v1 }
 0x170   :  { %1740 = vmatpush2.bf16.msra.mxu0 %v2638_v5  ;;  %1783 = vmatpush2.bf16.msra.mxu1 %v2640_v32 }
 0x171   :  { %1741 = vmatprep.subr.bf16.mxu0 %v2631_v18  ;;  %1784 = vmatprep.subr.bf16.mxu1 %v2633_v39 }
 0x174   :  { %1742 = vmatpush2.bf16.msra.mxu0 %v2630_v27  ;;  %1785 = vmatpush2.bf16.msra.mxu1 %v2632_v28  ;;  %v3305_v27 = vld [vmem:[%s3381_s4] sm:$0x3] }
 0x175   :  { %2232 = vmatprep.subr.bf16.mxu0 %v2818_v3 }
 0x177   :  { %1744 = vmatmul.mubr.bf16.vlgmr.msra.gmra.mxu0 %v3275_v6  ;;  %1787 = vmatmul.mubr.bf16.vlgmr.msra.gmra.mxu1 %v3275_v6  ;;  %v2833_v6 = vld [vmem:[#allocation7 + $0x24] ss:$8 sps:$4 sm:$0xff]  }
 0x178   :  { %2233 = vmatpush1.bf16.msra.mxu0 %v2816_v47 }
 0x179   :  { %2234 = vmatprep.subr.bf16.mxu0 %v2821_v29 }
 0x17c   :  { %2235 = vmatpush1.bf16.msra.mxu0 %v2819_v38 }
 0x17d   :  { %2236 = vmatprep.subr.bf16.mxu0 %v2824_v31 }
 0x180   :  { %2237 = vmatpush1.bf16.msra.mxu0 %v2822_v11 }
 0x181   :  { %2238 = vmatprep.subr.bf16.mxu0 %v2827_v26 }
 0x184   :  { %2239 = vmatpush1.bf16.msra.mxu0 %v2825_v45 }
 0x185   :  { %2240 = vmatprep.subr.bf16.mxu0 %v2830_v41 }
 0x188   :  { %2241 = vmatpush1.bf16.msra.mxu0 %v2828_v60  ;;  %v1842_v60 = vrot.slane %v3290_v13, %v3067_v51 }
 0x189   :  { %2242 = vmatprep.subr.bf16.mxu0 %v2833_v6  ;;  %v1846_v6 = vrot.slane %v3290_v13, %v3074_v53 }
 0x18c   :  { %2243 = vmatpush1.bf16.msra.mxu0 %v2831_v46  ;;  %v1901_v46 = vrot.slane %v3295_v62, %v3067_v51 }
 0x18d   :  { %2244 = vmatprep.subr.bf16.mxu0 %v2836_v50  ;;  %v2011_v50 = vrot.slane %v3300_v43, %v3067_v51 }
 0x190   :  { %2245 = vmatpush1.bf16.msra.mxu0 %v2834_v16 }
 0x191   :  { %2246 = vmatprep.subr.bf16.mxu0 %v2839_v61 }
 0x194   :  { %2247 = vmatpush1.bf16.msra.mxu0 %v2837_v12 }
 0x195   :  { %2248 = vmatprep.subr.bf16.mxu0 %v2842_v58 }
 0x198   :  { %2249 = vmatpush2.bf16.msra.mxu0 %v2840_v36  ;;  %v1905_v36 = vrot.slane %v3295_v62, %v3074_v53 }
 0x199   :  { %2250 = vmatprep.subr.bf16.mxu0 %v2845_v40  ;;  %v1960_v40 = vrot.slane %v3305_v27, %v3067_v51 }
 0x19c   :  { %2251 = vmatpush2.bf16.msra.mxu0 %v2843_v30 }
 0x19d   :  { %2252 = vmatprep.subr.bf16.mxu0 %v2848_v44 }
 0x1a0   :  { %2253 = vmatpush2.bf16.msra.mxu0 %v2846_v19 }
 0x1a1   :  { %2254 = vmatprep.subr.bf16.mxu0 %v2851_v21 }
 0x1a4   :  { %2255 = vmatpush2.bf16.msra.mxu0 %v2849_v20 }
 0x1a5   :  { %2256 = vmatprep.subr.bf16.mxu0 %v2854_v4 }
 0x1a8   :  { %2257 = vmatpush2.bf16.msra.mxu0 %v2852_v49  ;;  %v2015_v49 = vrot.slane %v3300_v43, %v3074_v53 }
 0x1a9   :  { %2258 = vmatprep.subr.bf16.mxu0 %v2857_v42 }
 0x1ac   :  { %2259 = vmatpush2.bf16.msra.mxu0 %v2855_v24 }
 0x1ad   :  { %2260 = vmatprep.subr.bf16.mxu0 %v2860_v55 }
 0x1b0   :  { %2261 = vmatpush2.bf16.msra.mxu0 %v2858_v57 }
 0x1b1   :  { %2262 = vmatprep.subr.bf16.mxu0 %v2863_v10 }
 0x1b4   :  { %2263 = vmatpush2.bf16.msra.mxu0 %v2861_v35 }
 0x1f7   :  { %v1659_v33 = vpop.f32.mrf.mxu0  ;;  %v1702_v52 = vpop.f32.mrf.mxu1 }
 0x1f8   :  { %1797 = vst [vmem:[#allocation4 + $0xa8] sm:$0xff] %v1659_v33  ;;  %1799 = vst [vmem:[#allocation4 + $0x10] sm:$0xff] %v1702_v52 }
 0x1f9   :  { %v1661_v17 = vpop.f32.mrf.mxu0  ;;  %v1704_v14 = vpop.f32.mrf.mxu1 }
 0x1fa   :  { %1798 = vst [vmem:[#allocation4 + $0xd0] sm:$0xff] %v1661_v17  ;;  %1800 = vst [vmem:[#allocation4 + $0x48] sm:$0xff] %v1704_v14 }
 0x1fb   :  { %v1663_v37 = vpop.f32.mrf.mxu0  ;;  %v1706_v48 = vpop.f32.mrf.mxu1 }
 0x1fc   :  { %1805 = vst [vmem:[#allocation4 + $0x80] sm:$0xff] %v1663_v37  ;;  %1807 = vst [vmem:[#allocation4 + $0xf8] sm:$0xff] %v1706_v48 }
 0x1fd   :  { %v1665_v25 = vpop.f32.mrf.mxu0  ;;  %v1708_v22 = vpop.f32.mrf.mxu1 }
 0x1fe   :  { %1806 = vst [vmem:[#allocation4 + $0xe0] sm:$0xff] %v1665_v25  ;;  %1808 = vst [vmem:[#allocation4 + $0xb8] sm:$0xff] %v1708_v22 }
 0x1ff   :  { %v1866_v23 = vld [vmem:[#allocation4 + $0x10] sm:$0x30]  ;;  %v1862_v28 = vld [vmem:[#allocation4 + $0xa8] sm:$0xc]  ;;  %v1921_v47 = vld [vmem:[#allocation4 + $0xa8] sm:$0xc0] }
 0x200   :  { %v1870_v15 = vrot.slane %v1866_v23, 2  ;;  %v1813_v11 = vld [vmem:[#allocation4 + $0x10] sm:$0x3] }
 0x201   :  { %v1867_v8 = vld [vmem:[#allocation4 + $0x48] sm:$0x30]  ;;  %v1863_v3 = vld [vmem:[#allocation4 + $0xd0] sm:$0xc]  ;;  %v1922_v16 = vld [vmem:[#allocation4 + $0xd0] sm:$0xc0] }
 0x202   :  { %v1871_v5 = vrot.slane %v1867_v8, 2  ;;  %v1874_v30 = vadd.f32 %v1870_v15, %v1862_v28  ;;  %v1814_v35 = vld [vmem:[#allocation4 + $0x48] sm:$0x3] }
 0x203   :  { %v1925_v56 = vld [vmem:[#allocation4 + $0xf8] sm:$0x3]  ;;  %v1986_v9 = vld [vmem:[#allocation4 + $0xf8] sm:$0x30]  ;;  %v1982_v61 = vld [vmem:[#allocation4 + $0x80] sm:$0xc] }
 0x204   :  { %v1929_v32 = vrot.slane %v1925_v56, 2  ;;  %v1990_v29 = vrot.slane %v1986_v9, 2  ;;  %v1875_v44 = vadd.f32 %v1871_v5, %v1863_v3  ;;  %v1964_v3 = vrot.slane %v3305_v27, %v3074_v53 }
 0x205   :  { %v1926_v2 = vld [vmem:[#allocation4 + $0xb8] sm:$0x3]  ;;  %v1987_v59 = vld [vmem:[#allocation4 + $0xb8] sm:$0x30]  ;;  %v1983_v42 = vld [vmem:[#allocation4 + $0xe0] sm:$0xc] }
 0x206   :  { %v1930_v38 = vrot.slane %v1926_v2, 2  ;;  %v1991_v31 = vrot.slane %v1987_v59, 2  ;;  %v1933_v19 = vadd.f32 %v1929_v32, %v1921_v47  ;;  %v1994_v33 = vadd.f32 %v1990_v29, %v1982_v61 }
 0x208   :  { %v1934_v52 = vadd.f32 %v1930_v38, %v1922_v16  ;;  %v1995_v17 = vadd.f32 %v1991_v31, %v1983_v42 }
 0x237   :  { %v1745_v54 = vpop.f32.mrf.mxu0  ;;  %v1788_v34 = vpop.f32.mrf.mxu1 }
 0x238   :  { %1801 = vst [vmem:[#allocation4 + $0x60] sm:$0xff] %v1745_v54  ;;  %1803 = vst [vmem:[#allocation4 + $0x40] sm:$0xff] %v1788_v34 }
 0x239   :  { %v1747_v63 = vpop.f32.mrf.mxu0  ;;  %v1790_v7 = vpop.f32.mrf.mxu1 }
 0x23a   :  { %1802 = vst [vmem:[#allocation4 + $0x28] sm:$0xff] %v1747_v63  ;;  %1804 = vst [vmem:[#allocation4 + $0x78] sm:$0xff] %v1790_v7 }
 0x23b   :  { %v1749_v0 = vpop.f32.mrf.mxu0  ;;  %v1792_v1 = vpop.f32.mrf.mxu1 }
 0x23c   :  { %1809 = vst [vmem:[#allocation4 + $0x20] sm:$0xff] %v1749_v0  ;;  %1811 = vst [vmem:[#allocation4 + $0xb0] sm:$0xff] %v1792_v1 }
 0x23d   :  { %v1751_v18 = vpop.f32.mrf.mxu0  ;;  %v1794_v39 = vpop.f32.mrf.mxu1 }
 0x23e   :  { %1810 = vst [vmem:[#allocation4 + $0xf0] sm:$0xff] %v1751_v18  ;;  %1812 = vst [vmem:[#allocation4 + $0x38] sm:$0xff] %v1794_v39 }
 0x23f   :  { %v1817_v26 = vld [vmem:[#allocation4 + $0x60] sm:$0xc]  ;;  %v1876_v45 = vld [vmem:[#allocation4 + $0x60] sm:$0xc0]  ;;  %v1827_v41 = vld [vmem:[#allocation4 + $0x40] sm:$0x30] }
 0x240   :  { %v1821_v12 = vrot.slane %v1817_v26, 2  ;;  %v1880_v58 = vrot.slane %v1876_v45, 4  ;;  %v1831_v55 = vrot.slane %v1827_v41, 4 }
 0x241   :  { %v1818_v20 = vld [vmem:[#allocation4 + $0x28] sm:$0xc]  ;;  %v1877_v21 = vld [vmem:[#allocation4 + $0x28] sm:$0xc0]  ;;  %v1828_v4 = vld [vmem:[#allocation4 + $0x78] sm:$0x30] }
 0x242   :  { %v1825_v24 = vadd.f32 %v1821_v12, %v1813_v11  ;;  %v1822_v57 = vrot.slane %v1818_v20, 2  ;;  %v1881_v10 = vrot.slane %v1877_v21, 4  ;;  %v1884_v14 = vadd.f32 %v1880_v58, %v1874_v30 }
 0x243   :  { %v1935_v51 = vld [vmem:[#allocation4 + $0x20] sm:$0xc]  ;;  %v1996_v37 = vld [vmem:[#allocation4 + $0x20] sm:$0xc0]  ;;  %v1832_v22 = vrot.slane %v1828_v4, 4 }
 0x244   :  { %v1835_v48 = vadd.f32 %v1831_v55, %v1825_v24  ;;  %v1826_v25 = vadd.f32 %v1822_v57, %v1814_v35  ;;  %v1939_v54 = vrot.slane %v1935_v51, 4  ;;  %v1886_v34 = vld [vmem:[#allocation4 + $0xb0] sm:$0x3]  ;;  %v1945_v63 = vld [vmem:[#allocation4 + $0xb0] sm:$0x30]  ;;  %v1885_v7 = vadd.f32 %v1881_v10, %v1875_v44 }
 0x245   :  { %v2000_v23 = vrot.slane %v1996_v37, 4  ;;  %v1890_v8 = vrot.slane %v1886_v34, 6  ;;  %v1949_v56 = vrot.slane %v1945_v63, 6  ;;  %v1936_v9 = vld [vmem:[#allocation4 + $0xf0] sm:$0xc]  ;;  %v2930_v37 = vmov 0.0  }
 0x246   :  { %v1849_v2 = vadd.f32 %v1842_v60, %v1835_v48  ;;  %v1836_v59 = vadd.f32 %v1832_v22, %v1826_v25  ;;  %v1943_v0 = vadd.f32 %v1939_v54, %v1933_v19  ;;  %v1940_v1 = vrot.slane %v1936_v9, 4  ;;  %v1997_v13 = vld [vmem:[#allocation4 + $0xf0] sm:$0xc0]  ;;  %v1887_v62 = vld [vmem:[#allocation4 + $0x38] sm:$0x3]  ;;  %2767 = vmatprep.subr.bf16.mxu1 %v2930_v37  ;;  %v2869_v22 = vld [vmem:[%s3384_s7 + $0x20] sm:$0xff]   ;;  %2783 = vmatprep.mubr.msk.bf16.mxu1 %vm2931_vm1, %v2930_v37 }
 0x247   :  { %v2004_v43 = vadd.f32 %v2000_v23, %v1994_v33  ;;  %v1894_v15 = vadd.f32 %v1890_v8, %v1884_v14  ;;  %v2001_v5 = vrot.slane %v1997_v13, 4  ;;  %v1891_v32 = vrot.slane %v1887_v62, 6  ;;  %v1946_v18 = vld [vmem:[#allocation4 + $0x38] sm:$0x30]  ;;  %v2866_v14 = vld [vmem:[%s3384_s7 + $0x38] sm:$0xff]   ;;  %v2868_v25 = vld [vmem:[%s3384_s7 + $0x28] sm:$0xff]  }
 0x248   :  { %v1850_v39 = vadd.f32 %v1846_v6, %v1836_v59  ;;  %v1953_v28 = vadd.f32 %v1949_v56, %v1943_v0  ;;  %v1944_v47 = vadd.f32 %v1940_v1, %v1934_v52  ;;  %v1950_v31 = vrot.slane %v1946_v18, 6  ;;  %2768 = vmatpush3.bf16.msra.mxu1 %v2866_v14  ;;  %v2867_v48 = vld [vmem:[%s3384_s7 + $0x30] sm:$0xff]   ;;  %v2870_v54 = vld [vmem:[%s3384_s7 + $0x18] sm:$0xff]   ;;  %v2872_v63 = vld [vmem:[%s3384_s7 + $0x8] sm:$0xff]  }
 0x249   :  { %v2005_v29 = vadd.f32 %v2001_v5, %v1995_v17  ;;  %v1895_v38 = vadd.f32 %v1891_v32, %v1885_v7  ;;  %v1908_v11 = vadd.f32 %v1901_v46, %v1894_v15  ;;  %v1851_v26 = vmax.f32 %v1849_v2, 0.0  ;;  %2769 = vmatprep.subr.bf16.mxu1 %v2930_v37  ;;  %v2871_v34 = vld [vmem:[%s3384_s7 + $0x10] sm:$0xff]   ;;  %v2873_v13 = vld [vmem:[%s3384_s7] sm:$0xff]  }
 0x24a   :  { %v1852_v45 = vmax.f32 %v1850_v39, 0.0  ;;  %v2018_v41 = vadd.f32 %v2011_v50, %v2004_v43  ;;  %v1954_v60 = vadd.f32 %v1950_v31, %v1944_v47  ;;  %v1967_v61 = vadd.f32 %v1960_v40, %v1953_v28 }
 0x24b   :  { %v1909_v16 = vadd.f32 %v1905_v36, %v1895_v38  ;;  %v2019_v12 = vadd.f32 %v2015_v49, %v2005_v29  ;;  %v1910_v30 = vmax.f32 %v1908_v11, 0.0  ;;  %v2729_v49 = vld [vmem:[%s3383_s6] ss:$0 sm:$0xff] }
 0x24c   :  { %v2751_v58 = vpack.c.bf16 %v1852_v45, %v1851_v26  ;;  %v1968_v6 = vadd.f32 %v1964_v3, %v1954_v60  ;;  %v2020_v19 = vmax.f32 %v2018_v41, 0.0  ;;  %v1969_v53 = vmax.f32 %v1967_v61, 0.0  ;;  %2296 = vrot.lane.b32.xlu1 %v2729_v49, %s2929_s23  ;;  %2770 = vmatpush3.bf16.msra.mxu1 %v2867_v48  ;;  %v2874_v45 = vld [vmem:[%s3386_s9 + $0x8] sm:$0xff]   ;;  %v2730_v41 = vld [vmem:[%s3385_s8] ss:$0 sm:$0xff]  ;;  %s2932_s8 = smov 96  }
 0x24d   :  { %v1911_v44 = vmax.f32 %v1909_v16, 0.0  ;;  %v2021_v20 = vmax.f32 %v2019_v12, 0.0  ;;  %2771 = vmatprep.subr.bf16.mxu1 %v2930_v37 }
 0x24e   :  { %1861 = vst [vmem:[#allocation3] sm:$0x11] %v2751_v58  ;;  %v1970_v27 = vmax.f32 %v1968_v6, 0.0  ;;  %v2875_v6 = vld [vmem:[%s3386_s9] sm:$0xff]  }
 0x24f   :  { %v2752_v21 = vpack.c.bf16 %v1911_v44, %v1910_v30  ;;  %v2754_v4 = vpack.c.bf16 %v2021_v20, %v2020_v19  ;;  %v2442_v20 = vld [vmem:[%s3388_s11] sm:$0x3] }
 0x250   :  { %v2753_v46 = vpack.c.bf16 %v1970_v27, %v1969_v53  ;;  %2772 = vmatpush3.bf16.msra.mxu1 %v2868_v25 }
 0x251   :  { %1920 = vst [vmem:[#allocation3] sm:$0x22] %v2752_v21  ;;  %v2029_v42 = vrot.slane %v2754_v4, 6  ;;  %2773 = vmatprep.subr.bf16.mxu1 %v2930_v37 }
 0x252   :  { %v2693_v24 = vrot.slane %v2753_v46, 9  ;;  %v2739_v46 = vld [vmem:[%s3387_s10] ss:$0 sm:$0xff] }
 0x253   :  { %2031 = vst [vmem:[#allocation3] sm:$0x88] %v2029_v42 }
 0x254   :  { %1981 = vst [vmem:[#allocation3] sm:$0x44] %v2693_v24  ;;  %2774 = vmatpush3.bf16.msra.mxu1 %v2869_v22 }
 0x255   :  { %2775 = vmatprep.subr.bf16.mxu1 %v2930_v37 }
 0x258   :  { %2776 = vmatpush3.bf16.msra.mxu1 %v2870_v54 }
 0x259   :  { %2777 = vmatprep.subr.bf16.mxu1 %v2930_v37 }
 0x25b   :  { %v2032_v50 = vld [vmem:[#allocation3] sm:$0xff] }
 0x25c   :  { %v2695_v36 = vcombine.low %v2032_v50, %v2032_v50  ;;  %v2696_v40 = vcombine.high %v2032_v50, %v2032_v50  ;;  %2778 = vmatpush3.bf16.msra.mxu1 %v2871_v34 }
 0x25d   :  { %2779 = vmatprep.subr.bf16.mxu1 %v2930_v37 }
 0x25e   :  { %2264 = vmatprep.mubr.bf16.mxu0 %v2696_v40 }
 0x25f   :  { %2265 = vmatmul.mubr.bf16.vlgmr.msra.gmra.mxu0 %v2695_v36 }
 0x260   :  { %2780 = vmatpush3.bf16.msra.mxu1 %v2872_v63 }
 0x261   :  { %2781 = vmatprep.subr.bf16.mxu1 %v2930_v37 }
 0x264   :  { %2782 = vmatpush3.bf16.msra.mxu1 %v2873_v13 }
 0x265   :  { %2787 = vmatprep.subr.bf16.mxu1 %v2930_v37 }
 0x2be   :  { %v2297_v5 = vpop.permute.xlu1 %2296 }
 0x31f   :  { %v2266_v55 = vpop.f32.mrf.mxu0 }
 0x320   :  { %2273 = vst [vmem:[#allocation4 + $0xa8] sm:$0xff] %v2266_v55 }
 0x321   :  { %v2268_v57 = vpop.f32.mrf.mxu0 }
 0x322   :  { %2274 = vst [vmem:[#allocation4 + $0xd0] sm:$0xff] %v2268_v57 }
 0x323   :  { %v2270_v10 = vpop.f32.mrf.mxu0 }
 0x325   :  { %v2271_v35 = vpop.f32.mrf.mxu0 }
 0x327   :  { %v2303_v33 = vld [vmem:[#allocation4 + $0xa8] sm:$0x30]  ;;  %v2301_v8 = vld [vmem:[#allocation4 + $0xa8] sm:$0xc]  ;;  %v2275_v0 = vld [vmem:[#allocation4 + $0xa8] sm:$0x3] }
 0x328   :  { %v2305_v52 = vrot.slane %v2303_v33, 2 }
 0x329   :  { %v2277_v17 = vld [vmem:[#allocation4 + $0xd0] sm:$0xc]  ;;  %v2310_v7 = vld [vmem:[#allocation4 + $0xd0] sm:$0xc0]  ;;  %v2284_v2 = vld [vmem:[#allocation4 + $0xd0] sm:$0x30] }
 0x32a   :  { %2306 = vrot.lane.b32.xlu0 %v2305_v52, %s2929_s23  ;;  %v2279_v51 = vrot.slane %v2277_v17, 2  ;;  %v2312_v9 = vrot.slane %v2310_v7, 4  ;;  %v2286_v15 = vrot.slane %v2284_v2, 4 }
 0x32e   :  { %2280 = vrot.lane.b32.xlu0 %v2279_v51, %s2929_s23 }
 0x39c   :  { %v2307_v23 = vpop.permute.xlu0 %2306 }
 0x39d   :  { %v2309_v56 = vadd.f32 %v2307_v23, %v2301_v8 }
 0x39f   :  { %v2314_v59 = vadd.f32 %v2312_v9, %v2309_v56 }
 0x3a0   :  { %v2281_v1 = vpop.permute.xlu0 %2280 }
 0x3a1   :  { %v2315_v62 = vadd.f32 %v2729_v49, %v2314_v59  ;;  %v2283_v43 = vadd.f32 %v2281_v1, %v2275_v0 }
 0x3a3   :  { %v2316_v32 = vmax.f32 %v2315_v62, 0.0  ;;  %v2288_v18 = vadd.f32 %v2286_v15, %v2283_v43 }
 0x3a5   :  { %v2299_v39 = vadd.f32 %v2297_v5, %v2288_v18  ;;  %v2322_v47 = vrot.slane %v2316_v32, 2 }
 0x3a7   :  { %v2300_v28 = vmax.f32 %v2299_v39, 0.0 }
 0x3a9   :  { %v2806_v3 = vpack.i.bf16 %v2322_v47, %v2300_v28 }
 0x3ab   :  { %2807 = vrot.lane.b32.xlu1 %v2806_v3, %s2929_s23 }
 0x41d   :  { %v2808_v29 = vpop.permute.xlu1 %2807 }
 0x41e   :  { %v2810_v38 = vunpack.i.h.bf16 %v2808_v29  ;;  %v2809_v31 = vunpack.i.l.bf16 %v2808_v29 }
 0x420   :  { %v2327_v11 = vsel %vm2326_vm2, %v2809_v31, %v2810_v38 }
 0x421   :  { %v2328_v26 = vpack.c.bf16 %v2327_v11, %v2327_v11 }
 0x423   :  { %2784 = vmatmul.mubr.bf16.vlgmr.msra.gmra.mxu1 %v2328_v26 }
 0x424   :  { %2791 = vmatprep.mubr.msk.bf16.mxu1 %vm2931_vm1, %v2930_v37  ;;  %2788 = vmatpush3.bf16.msra.mxu1 %v2874_v45 }
 0x425   :  { %2789 = vmatprep.subr.bf16.mxu1 %v2930_v37 }
 0x428   :  { %2790 = vmatpush3.bf16.msra.mxu1 %v2875_v6 }
 0x4e3   :  { %v2434_v60 = vpop.f32.mrf.mxu1 }
 0x4e4   :  { %v2435_v16 = vadd.f32 %v2730_v41, %v2434_v60 }
 0x4e5   :  { %v2785_v61 = vpop.f32.mrf.mxu1 }
 0x4e6   :  { %2441 = vst.msk [vmem:[%s3390_s13] sm:$0x3] %vm2440_vm3, %v2435_v16  ;;  %v2443_v12 = vmul.f32 0.5, %v2435_v16 }
 0x4e7   :  { %v2437_v58 = vpop.f32.mrf.mxu1 }
 0x4e8   :  { %v2444_v30 = vmul.f32 1.442695, %v2443_v12 }
 0x4e9   :  { %v2786_v44 = vpop.f32.mrf.mxu1 }
 0x4ea   :  { %2876 = vpow2.f32 %v2444_v30 }
 0x4f7   :  { %v2877_v19 = vpop.eup %2876 }
 0x4f8   :  { %2447 = vrot.lane.b32.xlu0 %v2877_v19, %s2932_s8 }
 0x56a   :  { %v2448_v21 = vpop.permute.xlu0 %2447 }
 0x56b   :  { %v2450_v53 = vmul.f32 %v2448_v21, %v2442_v20 }
 0x56d   :  { %v2451_v27 = vadd.f32 %v2450_v53, %v2435_v16 }
 0x56f   :  { %v2452_v4 = vpack.c.bf16 %v2451_v27, %v2451_v27 }
 0x571   :  { %2792 = vmatmul.mubr.msk.bf16.vlgmr.msra.gmra.mxu1 %vm2476_vm4, %v2452_v4 }
 0x631   :  { %v2514_v42 = vpop.f32.mrf.mxu1 }
 0x632   :  { %v2515_v24 = vadd.f32 %v2739_v46, %v2514_v42 }
 0x633   :  { %v2793_v50 = vpop.f32.mrf.mxu1 }
 0x634   :  { %2520 = vst [vmem:[%s3389_s12] sm:$0x3] %v2515_v24 }
 0x635   :  { %v2517_v36 = vpop.f32.mrf.mxu1 }
 0x637   :  { %v2794_v40 = vpop.f32.mrf.mxu1 }
 0x638   :  { %2529 = vsyncpa [#allocation6], 1 }
 0x639   :  { %2530 = vsyncpa [#allocation8], 1 }

</bundles_post_ra>
